<compile_context>
chip_gen: v5e
topology: v5e:2x2
jax: 0.10.0
libtpu: 0.0.40
codegen_flags: <defaults>
</compile_context>

<pallas_src>
import jax
import jax.numpy as jnp
import numpy as np
from jax.experimental import pallas as pl
from jax.experimental.pallas import tpu as pltpu

GRU_HIDDEN = 128          # GRU_HIDDEN_SIZE
H3 = 3 * GRU_HIDDEN       # 384 (r,z,n gates)
SENT_EMBED = 16           # SENT_EMBED_SIZE
FC_MID = 64
BERT_DIM = 768
VOCAB = 1000

# ---- packed-parameter slab layouts (static row offsets) ---------------------
# w_in_big (768, 768) bf16 : [:, 0:384] = s_wih ; [:, 384:768] = m_wih_cls
# w_rec    (146, 768) bf16 :
_REC_R_WIHS = GRU_HIDDEN               # rows 128:144  [m_wih_s | 0]
_REC_R_BIH = GRU_HIDDEN + SENT_EMBED   # row 144       [s_bih | m_bih]
_REC_R_BHH = _REC_R_BIH + 1            # row 145       [s_bhh | m_bhh]
_REC_ROWS = _REC_R_BHH + 1             # 146
# fc_slab  (224, 128) bf16 :
_FC_R_FC1B = 128                       # row 128       [s_fc1_b | h_fc1_b]
_FC_R_FCB = 129                        # row 129       [s_fc2_b | h_fc2_b | h_fc3_b]
_FC_R_FC2W = 144                       # rows 144:208  [s_fc2_w | h_fc2_w]
_FC_R_FC3W = 208                       # rows 208:224  [h_fc3_w]
_FC_ROWS = 224


# -----------------------------------------------------------------------------
# Fused kernel: grid step 0 = sentiment GRU + FCs, step 1 = main GRU + head.
# -----------------------------------------------------------------------------
def fused_fake_news_kernel(cls_ref, w_in_ref, w_rec_ref, fc_ref, out_ref,
                           s2m_scr):
    H, SE, FM = GRU_HIDDEN, SENT_EMBED, FC_MID
    j = pl.program_id(0)
    B = cls_ref.shape[0] // 2           # rows interleaved [t_title, t_text]

    # This step's half of the merged 768-wide input-weight matmul.  While the
    # sentiment recurrence below runs (step 0), the other half's weight DMA
    # streams in via the pipelined w_in BlockSpec.
    gi_half = jnp.dot(cls_ref[...].astype(jnp.bfloat16), w_in_ref[...],
                      preferred_element_type=jnp.float32)          # (2B, 384)

    def gru_gates(gi, gh, h):           # PyTorch gate order (r, z, n)
        r = jax.nn.sigmoid(gi[:, 0:H] + gh[:, 0:H])
        z = jax.nn.sigmoid(gi[:, H:2 * H] + gh[:, H:2 * H])
        n = jnp.tanh(gi[:, 2 * H:3 * H] + r * gh[:, 2 * H:3 * H])
        return (1.0 - z) * n + z * h

    @pl.when(j == 0)
    def _sentiment():
        s_whh = w_rec_ref[0:H, 0:H3]
        s_bih = w_rec_ref[_REC_R_BIH:_REC_R_BIH + 1, 0:H3]
        s_bhh = w_rec_ref[_REC_R_BHH:_REC_R_BHH + 1, 0:H3]
        gi_all = gi_half + s_bih
        # Reverse-direction cell driven in forward temporal order (the PyTorch
        # loop carries the hidden state across per-sentence length-1 calls).
        h = jnp.zeros((2, H), jnp.float32)
        states = []                      # per-step states stay in vregs
        for t in range(B):               # B small & static -> unrolled
            gh = jnp.dot(h.astype(jnp.bfloat16), s_whh,
                         preferred_element_type=jnp.float32) + s_bhh
            h = gru_gates(gi_all[2 * t:2 * t + 2, :], gh, h)
            states.append(h)
        emb_all = jnp.concatenate(states, axis=0)                   # (2B, 128)

        # Sentiment FC_1 / relu / FC_2, batched over all 2B steps at once.
        o = jnp.dot(emb_all.astype(jnp.bfloat16), fc_ref[0:H, 0:FM],
                    preferred_element_type=jnp.float32) \
            + fc_ref[_FC_R_FC1B:_FC_R_FC1B + 1, 0:FM]
        s_all = jnp.dot(jnp.maximum(o, 0.0).astype(jnp.bfloat16),
                        fc_ref[_FC_R_FC2W:_FC_R_FC2W + FM, 0:SE],
                        preferred_element_type=jnp.float32) \
            + fc_ref[_FC_R_FCB:_FC_R_FCB + 1, 0:SE]                 # (2B, 16)

        # Sentiment contribution to the main GRU input gates, carried to step 1.
        s2m_scr[...] = jnp.dot(s_all.astype(jnp.bfloat16),
                               w_rec_ref[_REC_R_WIHS:_REC_R_BIH, 0:H3],
                               preferred_element_type=jnp.float32)

    @pl.when(j == pl.num_programs(0) - 1)
    def _main_and_head():
        m_whh = w_rec_ref[0:H, H3:2 * H3]
        m_bih = w_rec_ref[_REC_R_BIH:_REC_R_BIH + 1, H3:2 * H3]
        m_bhh = w_rec_ref[_REC_R_BHH:_REC_R_BHH + 1, H3:2 * H3]
        gi_all = gi_half + s2m_scr[...] + m_bih
        h = jnp.zeros((2, H), jnp.float32)
        for t in range(B - 1, -1, -1):   # hidden[-1] == reverse direction
            gh = jnp.dot(h.astype(jnp.bfloat16), m_whh,
                         preferred_element_type=jnp.float32) + m_bhh
            h = gru_gates(gi_all[2 * t:2 * t + 2, :], gh, h)

        # Detection head on the averaged title/text embedding (count == 2).
        news = (h[0:1, :] + h[1:2, :]) * 0.5
        o = jnp.dot(news.astype(jnp.bfloat16), fc_ref[0:H, FM:2 * FM],
                    preferred_element_type=jnp.float32) \
            + fc_ref[_FC_R_FC1B:_FC_R_FC1B + 1, FM:2 * FM]
        o = jnp.dot(jnp.maximum(o, 0.0).astype(jnp.bfloat16),
                    fc_ref[_FC_R_FC2W:_FC_R_FC2W + FM, SE:2 * SE],
                    preferred_element_type=jnp.float32) \
            + fc_ref[_FC_R_FCB:_FC_R_FCB + 1, SE:2 * SE]
        o = jnp.dot(jnp.maximum(o, 0.0).astype(jnp.bfloat16),
                    fc_ref[_FC_R_FC3W:_FC_R_FC3W + SE, 0:1],
                    preferred_element_type=jnp.float32) \
            + fc_ref[_FC_R_FCB:_FC_R_FCB + 1, 2 * SE:2 * SE + 1]
        out_ref[...] = jax.nn.sigmoid(o)


# -----------------------------------------------------------------------------
# wrappers
# -----------------------------------------------------------------------------
def _bert_cls(tokens, mask, params):
    # TODO(synk): stand-in for BertModel(...)['last_hidden_state'][:, 0, :];
    # deterministic embedding-table lookup of token 0, attention mask unused.
    del mask
    return params['emb_table'][tokens[:, 0]]                        # (B, 768)


def fake_news_detection(titles, title_mask, texts, text_mask, params, packed):
    title_cls = _bert_cls(titles, title_mask, params)                # (B, 768)
    text_cls = _bert_cls(texts, text_mask, params)                   # (B, 768)
    B = title_cls.shape[0]
    # Timestep-major interleave: rows [t0_title, t0_text, t1_title, t1_text,...]
    cls_all = jnp.stack([title_cls, text_cls], axis=1).reshape(2 * B, BERT_DIM)

    grid_spec = pltpu.PrefetchScalarGridSpec(
        num_scalar_prefetch=0,
        grid=(2,),                       # step 0: sentiment half, 1: main half
        in_specs=[
            pl.BlockSpec((2 * B, BERT_DIM), lambda j: (0, 0)),
            pl.BlockSpec((BERT_DIM, H3), lambda j: (0, j)),  # pipelined halves
            pl.BlockSpec((_REC_ROWS, 2 * H3), lambda j: (0, 0)),
            pl.BlockSpec((_FC_ROWS, 128), lambda j: (0, 0)),
        ],
        out_specs=pl.BlockSpec((1, 1), lambda j: (0, 0)),
        scratch_shapes=[pltpu.VMEM((2 * B, H3), jnp.float32)],
    )
    return pl.pallas_call(
        fused_fake_news_kernel,
        out_shape=jax.ShapeDtypeStruct((1, 1), jnp.float32),
        grid_spec=grid_spec,
        compiler_params=pltpu.CompilerParams(
            # sequential: step 1 consumes step-0 scratch (single TensorCore;
            # splitting title/text across v7x cores only pays for much larger B)
            dimension_semantics=("arbitrary",)),
    )(cls_all, packed['w_in_big'], packed['w_rec'], packed['fc_slab'])


# -----------------------------------------------------------------------------
# pure-JAX reference (mirrors the PyTorch loop structure and the kernel's
# bf16-at-matmul casts) for correctness
# -----------------------------------------------------------------------------
def _ref_gru_cell(x, h, w_ih_t, w_hh_t, b_ih, b_hh):
    H = GRU_HIDDEN
    gi = jnp.dot(x.astype(jnp.bfloat16), w_ih_t,
                 preferred_element_type=jnp.float32) + b_ih
    gh = jnp.dot(h.astype(jnp.bfloat16), w_hh_t,
                 preferred_element_type=jnp.float32) + b_hh
    r = jax.nn.sigmoid(gi[:, 0:H] + gh[:, 0:H])
    z = jax.nn.sigmoid(gi[:, H:2 * H] + gh[:, H:2 * H])
    n = jnp.tanh(gi[:, 2 * H:3 * H] + r * gh[:, 2 * H:3 * H])
    return (1.0 - z) * n + z * h


def ref_doc_embed(cls_vec, p):
    B = cls_vec.shape[0]
    h_s = jnp.zeros((1, GRU_HIDDEN), jnp.float32)
    s_rows = []
    for t in range(B):
        h_s = _ref_gru_cell(cls_vec[t:t + 1], h_s, p['s_wih_b'], p['s_whh_b'],
                            p['s_bih_b'], p['s_bhh_b'])
        o = jnp.dot(h_s.astype(jnp.bfloat16), p['s_fc1_w'],
                    preferred_element_type=jnp.float32) + p['s_fc1_b']
        o = jnp.dot(jnp.maximum(o, 0.0).astype(jnp.bfloat16), p['s_fc2_w'],
                    preferred_element_type=jnp.float32) + p['s_fc2_b']
        s_rows.append(o)
    w_ih_main = jnp.concatenate([p['m_wih_cls_b'], p['m_wih_s_b']], axis=0)
    h_m = jnp.zeros((1, GRU_HIDDEN), jnp.float32)
    for t in range(B - 1, -1, -1):
        x = jnp.concatenate([cls_vec[t:t + 1], s_rows[t]], axis=1)
        h_m = _ref_gru_cell(x, h_m, w_ih_main, p['m_whh_b'],
                            p['m_bih_b'], p['m_bhh_b'])
    return h_m


def ref_forward(titles, title_mask, texts, text_mask, p):
    t_emb = ref_doc_embed(_bert_cls(titles, title_mask, p), p)
    x_emb = ref_doc_embed(_bert_cls(texts, text_mask, p), p)
    news = (t_emb + x_emb) * 0.5
    o = jnp.dot(news.astype(jnp.bfloat16), p['h_fc1_w'],
                preferred_element_type=jnp.float32) + p['h_fc1_b']
    o = jnp.dot(jnp.maximum(o, 0.0).astype(jnp.bfloat16), p['h_fc2_w'],
                preferred_element_type=jnp.float32) + p['h_fc2_b']
    o = jnp.dot(jnp.maximum(o, 0.0).astype(jnp.bfloat16), p['h_fc3_w'],
                preferred_element_type=jnp.float32) + p['h_fc3_b']
    return jax.nn.sigmoid(o)


# -----------------------------------------------------------------------------
# deterministic parameter construction & one-time packing
# -----------------------------------------------------------------------------
def make_params(key):
    H, D, SE, FM = GRU_HIDDEN, BERT_DIM, SENT_EMBED, FC_MID
    kg = 1.0 / np.sqrt(H)
    specs = {
        'emb_table': ((VOCAB, D), 0.05),
        # Sentiment GRU, reverse direction only (forward dir never feeds output).
        's_wih_b': ((D, 3 * H), kg), 's_whh_b': ((H, 3 * H), kg),
        's_bih_b': ((1, 3 * H), kg), 's_bhh_b': ((1, 3 * H), kg),
        # Sentiment FC_1 (128->64), FC_2 (64->16) -- transposed.
        's_fc1_w': ((H, FM), 1 / np.sqrt(H)), 's_fc1_b': ((1, FM), 1 / np.sqrt(H)),
        's_fc2_w': ((FM, SE), 1 / np.sqrt(FM)), 's_fc2_b': ((1, SE), 1 / np.sqrt(FM)),
        # Main GRU (input 768+16, hidden 128), reverse direction only.
        'm_wih_cls_b': ((D, 3 * H), kg), 'm_wih_s_b': ((SE, 3 * H), kg),
        'm_whh_b': ((H, 3 * H), kg),
        'm_bih_b': ((1, 3 * H), kg), 'm_bhh_b': ((1, 3 * H), kg),
        # Head FC_1 (128->64), FC_2 (64->16), FC_3 (16->1) -- transposed.
        'h_fc1_w': ((H, FM), 1 / np.sqrt(H)), 'h_fc1_b': ((1, FM), 1 / np.sqrt(H)),
        'h_fc2_w': ((FM, SE), 1 / np.sqrt(FM)), 'h_fc2_b': ((1, SE), 1 / np.sqrt(FM)),
        'h_fc3_w': ((SE, 1), 1 / np.sqrt(SE)), 'h_fc3_b': ((1, 1), 1 / np.sqrt(SE)),
    }
    keys = jax.random.split(key, len(specs))
    params = {}
    for k_rng, (name, (shape, scale)) in zip(keys, specs.items()):
        v = jax.random.uniform(k_rng, shape, jnp.float32,
                               minval=-scale, maxval=scale)
        params[name] = v if name == 'emb_table' else v.astype(jnp.bfloat16)
    return params


def pack_params(p):
    """One-time marshalling of the 18 GRU/FC params into 3 DMA-friendly slabs."""
    H, SE, FM = GRU_HIDDEN, SENT_EMBED, FC_MID
    w_in_big = jnp.concatenate([p['s_wih_b'], p['m_wih_cls_b']], axis=1)

    w_rec = jnp.zeros((_REC_ROWS, 2 * H3), jnp.bfloat16)
    w_rec = w_rec.at[0:H, 0:H3].set(p['s_whh_b'])
    w_rec = w_rec.at[0:H, H3:].set(p['m_whh_b'])
    w_rec = w_rec.at[_REC_R_WIHS:_REC_R_BIH, 0:H3].set(p['m_wih_s_b'])
    w_rec = w_rec.at[_REC_R_BIH, 0:H3].set(p['s_bih_b'][0])
    w_rec = w_rec.at[_REC_R_BIH, H3:].set(p['m_bih_b'][0])
    w_rec = w_rec.at[_REC_R_BHH, 0:H3].set(p['s_bhh_b'][0])
    w_rec = w_rec.at[_REC_R_BHH, H3:].set(p['m_bhh_b'][0])

    fc = jnp.zeros((_FC_ROWS, 128), jnp.bfloat16)
    fc = fc.at[0:H, 0:FM].set(p['s_fc1_w'])
    fc = fc.at[0:H, FM:2 * FM].set(p['h_fc1_w'])
    fc = fc.at[_FC_R_FC1B, 0:FM].set(p['s_fc1_b'][0])
    fc = fc.at[_FC_R_FC1B, FM:2 * FM].set(p['h_fc1_b'][0])
    fc = fc.at[_FC_R_FCB, 0:SE].set(p['s_fc2_b'][0])
    fc = fc.at[_FC_R_FCB, SE:2 * SE].set(p['h_fc2_b'][0])
    fc = fc.at[_FC_R_FCB, 2 * SE:2 * SE + 1].set(p['h_fc3_b'][0])
    fc = fc.at[_FC_R_FC2W:_FC_R_FC2W + FM, 0:SE].set(p['s_fc2_w'])
    fc = fc.at[_FC_R_FC2W:_FC_R_FC2W + FM, SE:2 * SE].set(p['h_fc2_w'])
    fc = fc.at[_FC_R_FC3W:_FC_R_FC3W + SE, 0:1].set(p['h_fc3_w'])
    return {'w_in_big': w_in_big, 'w_rec': w_rec, 'fc_slab': fc}


# -----------------------------------------------------------------------------
if __name__ == "__main__":
    root = jax.random.PRNGKey(0)
    k_params, k_titles, k_texts = jax.random.split(root, 3)
    params = make_params(k_params)
    packed = pack_params(params)

    B, S = 2, 8
    titles = jax.random.randint(k_titles, (B, S), 0, VOCAB, dtype=jnp.int32)
    texts = jax.random.randint(k_texts, (B, S), 0, VOCAB, dtype=jnp.int32)
    title_mask = jnp.ones((B, S), jnp.int32)
    text_mask = jnp.ones((B, S), jnp.int32)

    out = jax.block_until_ready(
        fake_news_detection(titles, title_mask, texts, text_mask,
                            params, packed))
    ref = jax.block_until_ready(
        ref_forward(titles, title_mask, texts, text_mask, params))
    np.testing.assert_allclose(np.asarray(out), np.asarray(ref),
                               rtol=2e-3, atol=2e-3)
    print("KERNEL_OK")
</pallas_src>

<mosaic_0001>
module attributes {stable_mosaic.version = 11 : i64} {
  func.func @fused_fake_news_kernel(%arg0: i32, %arg1: memref<4x768xf32, #tpu.memory_space<vmem>>, %arg2: memref<768x384xbf16, #tpu.memory_space<vmem>>, %arg3: memref<146x768xbf16, #tpu.memory_space<vmem>>, %arg4: memref<224x128xbf16, #tpu.memory_space<vmem>>, %arg5: memref<1x1xf32, #tpu.memory_space<vmem>>, %arg6: memref<4x384xf32, #tpu.memory_space<vmem>>) attributes {dimension_semantics = [#tpu.dimension_semantics<arbitrary>], iteration_bounds = array<i64: 2>, scalar_prefetch = 0 : i64, scratch_operands = 1 : i64, tpu.core_type = #tpu.core_type<tc>, window_params = [{pipeline_mode = #tpu.pipeline_mode<synchronous>, transform_indices = @transform_0, window_bounds = array<i64: 4, 768>}, {transform_indices = @transform_1, window_bounds = array<i64: 768, 384>}, {pipeline_mode = #tpu.pipeline_mode<synchronous>, transform_indices = @transform_2, window_bounds = array<i64: 146, 768>}, {pipeline_mode = #tpu.pipeline_mode<synchronous>, transform_indices = @transform_3, window_bounds = array<i64: 224, 128>}, {pipeline_mode = #tpu.pipeline_mode<synchronous>, transform_indices = @transform_4, window_bounds = array<i64: 1, 1>}]} {
    %c0 = arith.constant 0 : index
    %c0_0 = arith.constant 0 : index
    %0 = vector.load %arg1[%c0, %c0_0] : memref<4x768xf32, #tpu.memory_space<vmem>>, vector<4x768xf32>
    %1 = arith.truncf %0 : vector<4x768xf32> to vector<4x768xbf16>
    %c0_1 = arith.constant 0 : index
    %c0_2 = arith.constant 0 : index
    %2 = vector.load %arg2[%c0_1, %c0_2] : memref<768x384xbf16, #tpu.memory_space<vmem>>, vector<768x384xbf16>
    %cst = arith.constant dense<0.000000e+00> : vector<4x384xf32>
    %3 = tpu.matmul %1, %2, %cst {dimension_numbers = #tpu.dot_dimension_numbers<[1], [0], [0], [1], [0, 0, 1, 1], [], []>} : vector<4x768xbf16>, vector<768x384xbf16>, vector<4x384xf32> -> vector<4x384xf32>
    %c0_i32 = arith.constant 0 : i32
    %4 = arith.cmpi eq, %arg0, %c0_i32 : i32
    %5 = arith.extui %4 : i1 to i32
    %c0_i32_3 = arith.constant 0 : i32
    %6 = arith.cmpi ne, %5, %c0_i32_3 : i32
    scf.if %6 {
      %c0_5 = arith.constant 0 : index
      %c0_6 = arith.constant 0 : index
      %10 = vector.load %arg3[%c0_5, %c0_6] : memref<146x768xbf16, #tpu.memory_space<vmem>>, vector<128x384xbf16>
      %c144 = arith.constant 144 : index
      %c0_7 = arith.constant 0 : index
      %11 = vector.load %arg3[%c144, %c0_7] : memref<146x768xbf16, #tpu.memory_space<vmem>>, vector<1x384xbf16>
      %c145 = arith.constant 145 : index
      %c0_8 = arith.constant 0 : index
      %12 = vector.load %arg3[%c145, %c0_8] : memref<146x768xbf16, #tpu.memory_space<vmem>>, vector<1x384xbf16>
      %13 = arith.extf %11 : vector<1x384xbf16> to vector<1x384xf32>
      %14 = vector.broadcast %13 : vector<1x384xf32> to vector<4x384xf32>
      %15 = arith.addf %3, %14 : vector<4x384xf32>
      %cst_9 = arith.constant 0.000000e+00 : f32
      %16 = vector.broadcast %cst_9 : f32 to vector<2x128xf32>
      %17 = arith.truncf %16 : vector<2x128xf32> to vector<2x128xbf16>
      %cst_10 = arith.constant dense<0.000000e+00> : vector<2x384xf32>
      %18 = tpu.matmul %17, %10, %cst_10 {dimension_numbers = #tpu.dot_dimension_numbers<[1], [0], [0], [1], [0, 0, 1, 1], [], []>} : vector<2x128xbf16>, vector<128x384xbf16>, vector<2x384xf32> -> vector<2x384xf32>
      %19 = arith.extf %12 : vector<1x384xbf16> to vector<1x384xf32>
      %20 = vector.broadcast %19 : vector<1x384xf32> to vector<2x384xf32>
      %21 = arith.addf %18, %20 : vector<2x384xf32>
      %22 = vector.extract_strided_slice %15 {offsets = [0, 0], sizes = [2, 384], strides = [1, 1]} : vector<4x384xf32> to vector<2x384xf32>
      %23 = vector.extract_strided_slice %22 {offsets = [0, 0], sizes = [2, 128], strides = [1, 1]} : vector<2x384xf32> to vector<2x128xf32>
      %24 = vector.extract_strided_slice %21 {offsets = [0, 0], sizes = [2, 128], strides = [1, 1]} : vector<2x384xf32> to vector<2x128xf32>
      %25 = arith.addf %23, %24 : vector<2x128xf32>
      %26 = arith.negf %25 : vector<2x128xf32>
      %27 = math.exp %26 : vector<2x128xf32>
      %cst_11 = arith.constant 1.000000e+00 : f32
      %28 = vector.broadcast %cst_11 : f32 to vector<2x128xf32>
      %29 = arith.addf %28, %27 : vector<2x128xf32>
      %30 = arith.divf %28, %29 : vector<2x128xf32>
      %31 = vector.extract_strided_slice %22 {offsets = [0, 128], sizes = [2, 128], strides = [1, 1]} : vector<2x384xf32> to vector<2x128xf32>
      %32 = vector.extract_strided_slice %21 {offsets = [0, 128], sizes = [2, 128], strides = [1, 1]} : vector<2x384xf32> to vector<2x128xf32>
      %33 = arith.addf %31, %32 : vector<2x128xf32>
      %34 = arith.negf %33 : vector<2x128xf32>
      %35 = math.exp %34 : vector<2x128xf32>
      %cst_12 = arith.constant 1.000000e+00 : f32
      %36 = vector.broadcast %cst_12 : f32 to vector<2x128xf32>
      %37 = arith.addf %36, %35 : vector<2x128xf32>
      %38 = arith.divf %36, %37 : vector<2x128xf32>
      %39 = vector.extract_strided_slice %22 {offsets = [0, 256], sizes = [2, 128], strides = [1, 1]} : vector<2x384xf32> to vector<2x128xf32>
      %40 = vector.extract_strided_slice %21 {offsets = [0, 256], sizes = [2, 128], strides = [1, 1]} : vector<2x384xf32> to vector<2x128xf32>
      %41 = arith.mulf %30, %40 : vector<2x128xf32>
      %42 = arith.addf %39, %41 : vector<2x128xf32>
      %43 = math.tanh %42 : vector<2x128xf32>
      %cst_13 = arith.constant 1.000000e+00 : f32
      %44 = vector.broadcast %cst_13 : f32 to vector<2x128xf32>
      %45 = arith.subf %44, %38 : vector<2x128xf32>
      %46 = arith.mulf %45, %43 : vector<2x128xf32>
      %47 = arith.mulf %38, %16 : vector<2x128xf32>
      %48 = arith.addf %46, %47 : vector<2x128xf32>
      %49 = arith.truncf %48 : vector<2x128xf32> to vector<2x128xbf16>
      %cst_14 = arith.constant dense<0.000000e+00> : vector<2x384xf32>
      %50 = tpu.matmul %49, %10, %cst_14 {dimension_numbers = #tpu.dot_dimension_numbers<[1], [0], [0], [1], [0, 0, 1, 1], [], []>} : vector<2x128xbf16>, vector<128x384xbf16>, vector<2x384xf32> -> vector<2x384xf32>
      %51 = arith.extf %12 : vector<1x384xbf16> to vector<1x384xf32>
      %52 = vector.broadcast %51 : vector<1x384xf32> to vector<2x384xf32>
      %53 = arith.addf %50, %52 : vector<2x384xf32>
      %54 = vector.extract_strided_slice %15 {offsets = [2, 0], sizes = [2, 384], strides = [1, 1]} : vector<4x384xf32> to vector<2x384xf32>
      %55 = vector.extract_strided_slice %54 {offsets = [0, 0], sizes = [2, 128], strides = [1, 1]} : vector<2x384xf32> to vector<2x128xf32>
      %56 = vector.extract_strided_slice %53 {offsets = [0, 0], sizes = [2, 128], strides = [1, 1]} : vector<2x384xf32> to vector<2x128xf32>
      %57 = arith.addf %55, %56 : vector<2x128xf32>
      %58 = arith.negf %57 : vector<2x128xf32>
      %59 = math.exp %58 : vector<2x128xf32>
      %cst_15 = arith.constant 1.000000e+00 : f32
      %60 = vector.broadcast %cst_15 : f32 to vector<2x128xf32>
      %61 = arith.addf %60, %59 : vector<2x128xf32>
      %62 = arith.divf %60, %61 : vector<2x128xf32>
      %63 = vector.extract_strided_slice %54 {offsets = [0, 128], sizes = [2, 128], strides = [1, 1]} : vector<2x384xf32> to vector<2x128xf32>
      %64 = vector.extract_strided_slice %53 {offsets = [0, 128], sizes = [2, 128], strides = [1, 1]} : vector<2x384xf32> to vector<2x128xf32>
      %65 = arith.addf %63, %64 : vector<2x128xf32>
      %66 = arith.negf %65 : vector<2x128xf32>
      %67 = math.exp %66 : vector<2x128xf32>
      %cst_16 = arith.constant 1.000000e+00 : f32
      %68 = vector.broadcast %cst_16 : f32 to vector<2x128xf32>
      %69 = arith.addf %68, %67 : vector<2x128xf32>
      %70 = arith.divf %68, %69 : vector<2x128xf32>
      %71 = vector.extract_strided_slice %54 {offsets = [0, 256], sizes = [2, 128], strides = [1, 1]} : vector<2x384xf32> to vector<2x128xf32>
      %72 = vector.extract_strided_slice %53 {offsets = [0, 256], sizes = [2, 128], strides = [1, 1]} : vector<2x384xf32> to vector<2x128xf32>
      %73 = arith.mulf %62, %72 : vector<2x128xf32>
      %74 = arith.addf %71, %73 : vector<2x128xf32>
      %75 = math.tanh %74 : vector<2x128xf32>
      %cst_17 = arith.constant 1.000000e+00 : f32
      %76 = vector.broadcast %cst_17 : f32 to vector<2x128xf32>
      %77 = arith.subf %76, %70 : vector<2x128xf32>
      %78 = arith.mulf %77, %75 : vector<2x128xf32>
      %79 = arith.mulf %70, %48 : vector<2x128xf32>
      %80 = arith.addf %78, %79 : vector<2x128xf32>
      %81 = tpu.concatenate %48, %80 in 0 : vector<2x128xf32>, vector<2x128xf32> -> vector<4x128xf32>
      %82 = arith.truncf %81 : vector<4x128xf32> to vector<4x128xbf16>
      %c0_18 = arith.constant 0 : index
      %c0_19 = arith.constant 0 : index
      %83 = vector.load %arg4[%c0_18, %c0_19] : memref<224x128xbf16, #tpu.memory_space<vmem>>, vector<128x64xbf16>
      %cst_20 = arith.constant dense<0.000000e+00> : vector<4x64xf32>
      %84 = tpu.matmul %82, %83, %cst_20 {dimension_numbers = #tpu.dot_dimension_numbers<[1], [0], [0], [1], [0, 0, 1, 1], [], []>} : vector<4x128xbf16>, vector<128x64xbf16>, vector<4x64xf32> -> vector<4x64xf32>
      %c128 = arith.constant 128 : index
      %c0_21 = arith.constant 0 : index
      %85 = vector.load %arg4[%c128, %c0_21] : memref<224x128xbf16, #tpu.memory_space<vmem>>, vector<1x64xbf16>
      %86 = arith.extf %85 : vector<1x64xbf16> to vector<1x64xf32>
      %87 = vector.broadcast %86 : vector<1x64xf32> to vector<4x64xf32>
      %88 = arith.addf %84, %87 : vector<4x64xf32>
      %cst_22 = arith.constant 0.000000e+00 : f32
      %89 = vector.broadcast %cst_22 : f32 to vector<4x64xf32>
      %90 = arith.maximumf %88, %89 : vector<4x64xf32>
      %91 = arith.truncf %90 : vector<4x64xf32> to vector<4x64xbf16>
      %c144_23 = arith.constant 144 : index
      %c0_24 = arith.constant 0 : index
      %92 = vector.load %arg4[%c144_23, %c0_24] : memref<224x128xbf16, #tpu.memory_space<vmem>>, vector<64x16xbf16>
      %cst_25 = arith.constant dense<0.000000e+00> : vector<4x16xf32>
      %93 = tpu.matmul %91, %92, %cst_25 {dimension_numbers = #tpu.dot_dimension_numbers<[1], [0], [0], [1], [0, 0, 1, 1], [], []>} : vector<4x64xbf16>, vector<64x16xbf16>, vector<4x16xf32> -> vector<4x16xf32>
      %c129 = arith.constant 129 : index
      %c0_26 = arith.constant 0 : index
      %94 = vector.load %arg4[%c129, %c0_26] : memref<224x128xbf16, #tpu.memory_space<vmem>>, vector<1x16xbf16>
      %95 = arith.extf %94 : vector<1x16xbf16> to vector<1x16xf32>
      %96 = vector.broadcast %95 : vector<1x16xf32> to vector<4x16xf32>
      %97 = arith.addf %93, %96 : vector<4x16xf32>
      %98 = arith.truncf %97 : vector<4x16xf32> to vector<4x16xbf16>
      %c128_27 = arith.constant 128 : index
      %c0_28 = arith.constant 0 : index
      %99 = vector.load %arg3[%c128_27, %c0_28] : memref<146x768xbf16, #tpu.memory_space<vmem>>, vector<16x384xbf16>
      %cst_29 = arith.constant dense<0.000000e+00> : vector<4x384xf32>
      %100 = tpu.matmul %98, %99, %cst_29 {dimension_numbers = #tpu.dot_dimension_numbers<[1], [0], [0], [1], [0, 0, 1, 1], [], []>} : vector<4x16xbf16>, vector<16x384xbf16>, vector<4x384xf32> -> vector<4x384xf32>
      %c0_30 = arith.constant 0 : index
      %c0_31 = arith.constant 0 : index
      %101 = vector.load %arg6[%c0_30, %c0_31] : memref<4x384xf32, #tpu.memory_space<vmem>>, vector<4x384xf32>
      tpu.vector_store %arg6[%c0_30, %c0_31], %100 {strides = array<i32>} : memref<4x384xf32, #tpu.memory_space<vmem>>, vector<4x384xf32>,
    } else {
    }
    %c1_i32 = arith.constant 1 : i32
    %7 = arith.cmpi eq, %arg0, %c1_i32 : i32
    %8 = arith.extui %7 : i1 to i32
    %c0_i32_4 = arith.constant 0 : i32
    %9 = arith.cmpi ne, %8, %c0_i32_4 : i32
    scf.if %9 {
      %c0_5 = arith.constant 0 : index
      %c384 = arith.constant 384 : index
      %10 = vector.load %arg3[%c0_5, %c384] : memref<146x768xbf16, #tpu.memory_space<vmem>>, vector<128x384xbf16>
      %c144 = arith.constant 144 : index
      %c384_6 = arith.constant 384 : index
      %11 = vector.load %arg3[%c144, %c384_6] : memref<146x768xbf16, #tpu.memory_space<vmem>>, vector<1x384xbf16>
      %c145 = arith.constant 145 : index
      %c384_7 = arith.constant 384 : index
      %12 = vector.load %arg3[%c145, %c384_7] : memref<146x768xbf16, #tpu.memory_space<vmem>>, vector<1x384xbf16>
      %c0_8 = arith.constant 0 : index
      %c0_9 = arith.constant 0 : index
      %13 = vector.load %arg6[%c0_8, %c0_9] : memref<4x384xf32, #tpu.memory_space<vmem>>, vector<4x384xf32>
      %14 = arith.addf %3, %13 : vector<4x384xf32>
      %15 = arith.extf %11 : vector<1x384xbf16> to vector<1x384xf32>
      %16 = vector.broadcast %15 : vector<1x384xf32> to vector<4x384xf32>
      %17 = arith.addf %14, %16 : vector<4x384xf32>
      %cst_10 = arith.constant 0.000000e+00 : f32
      %18 = vector.broadcast %cst_10 : f32 to vector<2x128xf32>
      %19 = arith.truncf %18 : vector<2x128xf32> to vector<2x128xbf16>
      %cst_11 = arith.constant dense<0.000000e+00> : vector<2x384xf32>
      %20 = tpu.matmul %19, %10, %cst_11 {dimension_numbers = #tpu.dot_dimension_numbers<[1], [0], [0], [1], [0, 0, 1, 1], [], []>} : vector<2x128xbf16>, vector<128x384xbf16>, vector<2x384xf32> -> vector<2x384xf32>
      %21 = arith.extf %12 : vector<1x384xbf16> to vector<1x384xf32>
      %22 = vector.broadcast %21 : vector<1x384xf32> to vector<2x384xf32>
      %23 = arith.addf %20, %22 : vector<2x384xf32>
      %24 = vector.extract_strided_slice %17 {offsets = [2, 0], sizes = [2, 384], strides = [1, 1]} : vector<4x384xf32> to vector<2x384xf32>
      %25 = vector.extract_strided_slice %24 {offsets = [0, 0], sizes = [2, 128], strides = [1, 1]} : vector<2x384xf32> to vector<2x128xf32>
      %26 = vector.extract_strided_slice %23 {offsets = [0, 0], sizes = [2, 128], strides = [1, 1]} : vector<2x384xf32> to vector<2x128xf32>
      %27 = arith.addf %25, %26 : vector<2x128xf32>
      %28 = arith.negf %27 : vector<2x128xf32>
      %29 = math.exp %28 : vector<2x128xf32>
      %cst_12 = arith.constant 1.000000e+00 : f32
      %30 = vector.broadcast %cst_12 : f32 to vector<2x128xf32>
      %31 = arith.addf %30, %29 : vector<2x128xf32>
      %32 = arith.divf %30, %31 : vector<2x128xf32>
      %33 = vector.extract_strided_slice %24 {offsets = [0, 128], sizes = [2, 128], strides = [1, 1]} : vector<2x384xf32> to vector<2x128xf32>
      %34 = vector.extract_strided_slice %23 {offsets = [0, 128], sizes = [2, 128], strides = [1, 1]} : vector<2x384xf32> to vector<2x128xf32>
      %35 = arith.addf %33, %34 : vector<2x128xf32>
      %36 = arith.negf %35 : vector<2x128xf32>
      %37 = math.exp %36 : vector<2x128xf32>
      %cst_13 = arith.constant 1.000000e+00 : f32
      %38 = vector.broadcast %cst_13 : f32 to vector<2x128xf32>
      %39 = arith.addf %38, %37 : vector<2x128xf32>
      %40 = arith.divf %38, %39 : vector<2x128xf32>
      %41 = vector.extract_strided_slice %24 {offsets = [0, 256], sizes = [2, 128], strides = [1, 1]} : vector<2x384xf32> to vector<2x128xf32>
      %42 = vector.extract_strided_slice %23 {offsets = [0, 256], sizes = [2, 128], strides = [1, 1]} : vector<2x384xf32> to vector<2x128xf32>
      %43 = arith.mulf %32, %42 : vector<2x128xf32>
      %44 = arith.addf %41, %43 : vector<2x128xf32>
      %45 = math.tanh %44 : vector<2x128xf32>
      %cst_14 = arith.constant 1.000000e+00 : f32
      %46 = vector.broadcast %cst_14 : f32 to vector<2x128xf32>
      %47 = arith.subf %46, %40 : vector<2x128xf32>
      %48 = arith.mulf %47, %45 : vector<2x128xf32>
      %49 = arith.mulf %40, %18 : vector<2x128xf32>
      %50 = arith.addf %48, %49 : vector<2x128xf32>
      %51 = arith.truncf %50 : vector<2x128xf32> to vector<2x128xbf16>
      %cst_15 = arith.constant dense<0.000000e+00> : vector<2x384xf32>
      %52 = tpu.matmul %51, %10, %cst_15 {dimension_numbers = #tpu.dot_dimension_numbers<[1], [0], [0], [1], [0, 0, 1, 1], [], []>} : vector<2x128xbf16>, vector<128x384xbf16>, vector<2x384xf32> -> vector<2x384xf32>
      %53 = arith.extf %12 : vector<1x384xbf16> to vector<1x384xf32>
      %54 = vector.broadcast %53 : vector<1x384xf32> to vector<2x384xf32>
      %55 = arith.addf %52, %54 : vector<2x384xf32>
      %56 = vector.extract_strided_slice %17 {offsets = [0, 0], sizes = [2, 384], strides = [1, 1]} : vector<4x384xf32> to vector<2x384xf32>
      %57 = vector.extract_strided_slice %56 {offsets = [0, 0], sizes = [2, 128], strides = [1, 1]} : vector<2x384xf32> to vector<2x128xf32>
      %58 = vector.extract_strided_slice %55 {offsets = [0, 0], sizes = [2, 128], strides = [1, 1]} : vector<2x384xf32> to vector<2x128xf32>
      %59 = arith.addf %57, %58 : vector<2x128xf32>
      %60 = arith.negf %59 : vector<2x128xf32>
      %61 = math.exp %60 : vector<2x128xf32>
      %cst_16 = arith.constant 1.000000e+00 : f32
      %62 = vector.broadcast %cst_16 : f32 to vector<2x128xf32>
      %63 = arith.addf %62, %61 : vector<2x128xf32>
      %64 = arith.divf %62, %63 : vector<2x128xf32>
      %65 = vector.extract_strided_slice %56 {offsets = [0, 128], sizes = [2, 128], strides = [1, 1]} : vector<2x384xf32> to vector<2x128xf32>
      %66 = vector.extract_strided_slice %55 {offsets = [0, 128], sizes = [2, 128], strides = [1, 1]} : vector<2x384xf32> to vector<2x128xf32>
      %67 = arith.addf %65, %66 : vector<2x128xf32>
      %68 = arith.negf %67 : vector<2x128xf32>
      %69 = math.exp %68 : vector<2x128xf32>
      %cst_17 = arith.constant 1.000000e+00 : f32
      %70 = vector.broadcast %cst_17 : f32 to vector<2x128xf32>
      %71 = arith.addf %70, %69 : vector<2x128xf32>
      %72 = arith.divf %70, %71 : vector<2x128xf32>
      %73 = vector.extract_strided_slice %56 {offsets = [0, 256], sizes = [2, 128], strides = [1, 1]} : vector<2x384xf32> to vector<2x128xf32>
      %74 = vector.extract_strided_slice %55 {offsets = [0, 256], sizes = [2, 128], strides = [1, 1]} : vector<2x384xf32> to vector<2x128xf32>
      %75 = arith.mulf %64, %74 : vector<2x128xf32>
      %76 = arith.addf %73, %75 : vector<2x128xf32>
      %77 = math.tanh %76 : vector<2x128xf32>
      %cst_18 = arith.constant 1.000000e+00 : f32
      %78 = vector.broadcast %cst_18 : f32 to vector<2x128xf32>
      %79 = arith.subf %78, %72 : vector<2x128xf32>
      %80 = arith.mulf %79, %77 : vector<2x128xf32>
      %81 = arith.mulf %72, %50 : vector<2x128xf32>
      %82 = arith.addf %80, %81 : vector<2x128xf32>
      %83 = vector.extract_strided_slice %82 {offsets = [0, 0], sizes = [1, 128], strides = [1, 1]} : vector<2x128xf32> to vector<1x128xf32>
      %84 = vector.extract_strided_slice %82 {offsets = [1, 0], sizes = [1, 128], strides = [1, 1]} : vector<2x128xf32> to vector<1x128xf32>
      %85 = arith.addf %83, %84 : vector<1x128xf32>
      %cst_19 = arith.constant 5.000000e-01 : f32
      %86 = vector.broadcast %cst_19 : f32 to vector<1x128xf32>
      %87 = arith.mulf %85, %86 : vector<1x128xf32>
      %88 = arith.truncf %87 : vector<1x128xf32> to vector<1x128xbf16>
      %c0_20 = arith.constant 0 : index
      %c64 = arith.constant 64 : index
      %89 = vector.load %arg4[%c0_20, %c64] : memref<224x128xbf16, #tpu.memory_space<vmem>>, vector<128x64xbf16>
      %cst_21 = arith.constant dense<0.000000e+00> : vector<1x64xf32>
      %90 = tpu.matmul %88, %89, %cst_21 {dimension_numbers = #tpu.dot_dimension_numbers<[1], [0], [0], [1], [0, 0, 1, 1], [], []>} : vector<1x128xbf16>, vector<128x64xbf16>, vector<1x64xf32> -> vector<1x64xf32>
      %c128 = arith.constant 128 : index
      %c64_22 = arith.constant 64 : index
      %91 = vector.load %arg4[%c128, %c64_22] : memref<224x128xbf16, #tpu.memory_space<vmem>>, vector<1x64xbf16>
      %92 = arith.extf %91 : vector<1x64xbf16> to vector<1x64xf32>
      %93 = arith.addf %90, %92 : vector<1x64xf32>
      %cst_23 = arith.constant 0.000000e+00 : f32
      %94 = vector.broadcast %cst_23 : f32 to vector<1x64xf32>
      %95 = arith.maximumf %93, %94 : vector<1x64xf32>
      %96 = arith.truncf %95 : vector<1x64xf32> to vector<1x64xbf16>
      %c144_24 = arith.constant 144 : index
      %c16 = arith.constant 16 : index
      %97 = vector.load %arg4[%c144_24, %c16] : memref<224x128xbf16, #tpu.memory_space<vmem>>, vector<64x16xbf16>
      %cst_25 = arith.constant dense<0.000000e+00> : vector<1x16xf32>
      %98 = tpu.matmul %96, %97, %cst_25 {dimension_numbers = #tpu.dot_dimension_numbers<[1], [0], [0], [1], [0, 0, 1, 1], [], []>} : vector<1x64xbf16>, vector<64x16xbf16>, vector<1x16xf32> -> vector<1x16xf32>
      %c129 = arith.constant 129 : index
      %c16_26 = arith.constant 16 : index
      %99 = vector.load %arg4[%c129, %c16_26] : memref<224x128xbf16, #tpu.memory_space<vmem>>, vector<1x16xbf16>
      %100 = arith.extf %99 : vector<1x16xbf16> to vector<1x16xf32>
      %101 = arith.addf %98, %100 : vector<1x16xf32>
      %cst_27 = arith.constant 0.000000e+00 : f32
      %102 = vector.broadcast %cst_27 : f32 to vector<1x16xf32>
      %103 = arith.maximumf %101, %102 : vector<1x16xf32>
      %104 = arith.truncf %103 : vector<1x16xf32> to vector<1x16xbf16>
      %c208 = arith.constant 208 : index
      %c0_28 = arith.constant 0 : index
      %105 = vector.load %arg4[%c208, %c0_28] : memref<224x128xbf16, #tpu.memory_space<vmem>>, vector<16x1xbf16>
      %cst_29 = arith.constant dense<0.000000e+00> : vector<1x1xf32>
      %106 = tpu.matmul %104, %105, %cst_29 {dimension_numbers = #tpu.dot_dimension_numbers<[1], [0], [0], [1], [0, 0, 1, 1], [], []>} : vector<1x16xbf16>, vector<16x1xbf16>, vector<1x1xf32> -> vector<1x1xf32>
      %c129_30 = arith.constant 129 : index
      %c32 = arith.constant 32 : index
      %107 = vector.load %arg4[%c129_30, %c32] : memref<224x128xbf16, #tpu.memory_space<vmem>>, vector<1x1xbf16>
      %108 = arith.extf %107 : vector<1x1xbf16> to vector<1x1xf32>
      %109 = arith.addf %106, %108 : vector<1x1xf32>
      %110 = arith.negf %109 : vector<1x1xf32>
      %111 = math.exp %110 : vector<1x1xf32>
      %cst_31 = arith.constant 1.000000e+00 : f32
      %112 = vector.broadcast %cst_31 : f32 to vector<1x1xf32>
      %113 = arith.addf %112, %111 : vector<1x1xf32>
      %114 = arith.divf %112, %113 : vector<1x1xf32>
      %c0_32 = arith.constant 0 : index
      %c0_33 = arith.constant 0 : index
      %115 = vector.load %arg5[%c0_32, %c0_33] : memref<1x1xf32, #tpu.memory_space<vmem>>, vector<1x1xf32>
      tpu.vector_store %arg5[%c0_32, %c0_33], %114 {strides = array<i32>} : memref<1x1xf32, #tpu.memory_space<vmem>>, vector<1x1xf32>,
    } else {
    }
    return
  }
  func.func @transform_0(%arg0: i32) -> (i32, i32) {
    %c0_i32 = arith.constant 0 : i32
    %c0_i32_0 = arith.constant 0 : i32
    %c0_i32_1 = arith.constant 0 : i32
    return %c0_i32, %c0_i32_0 : i32, i32
  }
  func.func @transform_1(%arg0: i32) -> (i32, i32) {
    %c0_i32 = arith.constant 0 : i32
    %c0_i32_0 = arith.constant 0 : i32
    return %c0_i32, %arg0 : i32, i32
  }
  func.func @transform_2(%arg0: i32) -> (i32, i32) {
    %c0_i32 = arith.constant 0 : i32
    %c0_i32_0 = arith.constant 0 : i32
    %c0_i32_1 = arith.constant 0 : i32
    return %c0_i32, %c0_i32_0 : i32, i32
  }
  func.func @transform_3(%arg0: i32) -> (i32, i32) {
    %c0_i32 = arith.constant 0 : i32
    %c0_i32_0 = arith.constant 0 : i32
    %c0_i32_1 = arith.constant 0 : i32
    return %c0_i32, %c0_i32_0 : i32, i32
  }
  func.func @transform_4(%arg0: i32) -> (i32, i32) {
    %c0_i32 = arith.constant 0 : i32
    %c0_i32_0 = arith.constant 0 : i32
    %c0_i32_1 = arith.constant 0 : i32
    return %c0_i32, %c0_i32_0 : i32, i32
  }
}

</mosaic_0001>

<bundles_post_ra>
// kernel: tpu_custom_call.1
= control target key start
LH: loop header
LB: loop body
LE: loop exit
PB: predicated region body
PF: predicated region fallthrough
CT: control target
= control target key end

     0   :  { %s4849_s0 = inlined_call_operand.hbm [shape: f32[4,768], index: 0, kind: input, shape index: {}]   ;;  %s4850_s1 = inlined_call_operand.hbm [shape: bf16[768,768], index: 1, kind: input, shape index: {}]   ;;  %s4851_s2 = inlined_call_operand.hbm [shape: bf16[146,768], index: 2, kind: input, shape index: {}]   ;;  %s4852_s3 = inlined_call_operand.hbm [shape: bf16[224,128], index: 3, kind: input, shape index: {}]   ;;  %s4853_s4 = inlined_call_operand.hbm [shape: f32[1,1], index: 4, kind: output, shape index: {}]  }
   0x1   :  { %4855 = sst [smem:[#allocation17_spill]] %s4849_s0 }
   0x2   :  { %9 = vsyncpa [#allocation4], 0 }
   0x3   :  { %10 = vsyncpa [#allocation7], 0 }
   0x4   :  { %12 = vsyncpa [#allocation7 + $0x1], 0 }
   0x5   :  { %13 = vsyncpa [#allocation10], 0 }
   0x6   :  { %14 = vsyncpa [#allocation5], 0  ;;  %s4247_s15 = smov 0   ;;  %s4249_s16 = smov 0  }
   0x7   :  { %s4251_s17 = smov 0   ;;  %s4253_s18 = smov 0  }
   0x8 LB: > { %s4266_s19 = sadd.s32 4294967295, %s4205_s18   ;;  %s4269_s20 = sadd.s32 1, %s4205_s18   ;;  %s4205_s18 = sphi %s4253_s18, %s4866_s18   ;;  %s4201_s17 = sphi %s4251_s17, %s4865_s17   ;;  %s4197_s16 = sphi %s4249_s16, %s4864_s16   ;;  %s4193_s15 = sphi %s4247_s15, %s4863_s15  }
   0x9   : > { %s45_s21 = ssub.s32 %s4205_s18, %s4269_s20  ;;  %s48_s22 = sadd.s32 1, %s4201_s17 }
   0xa   : > { %p46_p0 = scmp.eq.s32.totalorder %s45_s21, 0  ;;  %p55_p1 = scmp.ne.s32.totalorder %s4201_s17, %s4197_s16 }
   0xb   : > { %p56_p2 = scmp.eq.s32.totalorder %s4205_s18, 0  ;;  %p61_p3 = scmp.ne.s32.totalorder %s4197_s16, %s4193_s15 }
   0xc   : > { %s4279_s23 = scalar_select %p46_p0, %s4201_s17, %s48_s22  }
   0xd   : > { %p4281_p4 = por %p56_p2, %p55_p1  ;;  %p62_p5 = scmp.eq.s32.totalorder %s4266_s19, 0 }
   0xe   : > { %p2741_p6 = scmp.ge.s32.totalorder %s4205_s18, 1  ;;  %p135_p7 = scmp.lt.s32.totalorder %s4205_s18, 3 }
   0xf   : > { %p4290_p8 = por %p62_p5, %p61_p3  ;;  %p2742_p9 = scmp.ne.s32.totalorder %s4266_s19, 0 }
  0x10   : > { %p4295_p10 = pnand %p2741_p6, %p135_p7  ;;  %s158_s29 = sshll.u32 %s4851_s2, 4  ;;  %s159_s29 = int_to_ptr.hbm [resolvable:$true] %s158_s29 }
  0x11   : > { %s4207_s30 = smov [#allocation8]   ;;  %p3910_p13 = scmp.lt.s32.totalorder %s4205_s18, 2 }
  0x12   : > { %p3893_p11 = pneg %p4295_p10  ;;  %s160_s5 = sshll.u32 %s4207_s30, 4  ;;  %s161_s5 = int_to_ptr.vmem [resolvable:$true] %s160_s5 }
  0x13   : > { %s4860_s0 = sld [smem:[#allocation17_spill]]  ;;  %s4854_s10 = smov 384  }
  0x14   : > { %p4306_p12 = pnand %p3893_p11, %p62_p5  ;;  %s4209_s11 = smov 24  }
  0x15   : > { %p4320_p0 = pnand %p3910_p13, %p4281_p4  ;;  %s172_s15 = sshll.u32 %s4852_s3, 4  ;;  %s173_s15 = int_to_ptr.hbm [resolvable:$true] %s172_s15 }
  0x16   : > { %3899 = dma.hbm_to_vmem [thread:$0]  (!%p4306_p12), %s159_s29, 7296, %s161_s5, [#allocation7], %s4854_s10, %s4854_s10, %s4209_s11  }
  0x17   : > { %s4210_s21 = smov [#allocation3]   ;;  %s4211_s27 = smov [#allocation9]  }
  0x18   : > { %s149_s22 = sshll.u32 %s4210_s21, 4  ;;  %s174_s28 = sshll.u32 %s4211_s27, 4  ;;  %s150_s22 = int_to_ptr.vmem [resolvable:$true] %s149_s22  ;;  %s175_s28 = int_to_ptr.vmem [resolvable:$true] %s174_s28 }
  0x19   : > { %s147_s9 = sshll.u32 %s4860_s0, 4  ;;  %s188_s24 = sand.u32 1, %s4205_s18   ;;  %s148_s9 = int_to_ptr.hbm [resolvable:$true] %s147_s9 }
  0x1a   : > { %3896 = dma.hbm_to_vmem [thread:$0]  (!%p4306_p12), %s148_s9, 384, %s150_s22, [#allocation4]  }
  0x1b   : > { %s4212_s29 = smov 64   ;;  %s4213_s30 = smov 4  }
  0x1c   : > { %3902 = dma.hbm_to_vmem [thread:$0]  (!%p4306_p12), %s173_s15, 1792, %s175_s28, [#allocation10], %s4212_s29, %s4212_s29, %s4213_s30  }
  0x1d   : > { %s190_s5 = sand.u32 1, %s4201_s17   ;;  %s3652_s8 = smul.u32 12, %s4205_s18 }
  0x1e   : > { %s3873_s7 = smul.u32 1152, %s190_s5  ;;  %s189_s9 = scalar_lea.sflag [#allocation7], %s188_s24 }
  0x1f   : > { %s197_s14 = scalar_lea.hbm %s4850_s1, %s3652_s8  ;;  %p4101_p2 = pneg %p4320_p0 }
  0x20   : > { %s192_s21 = scalar_lea.vmem [#allocation6], %s3873_s7  ;;  %s198_s0 = sshll.u32 %s197_s14, 4  ;;  %s199_s0 = int_to_ptr.hbm [resolvable:$true] %s198_s0 }
  0x21   : > { %s200_s10 = sshll.u32 %s192_s21, 4  ;;  %s4097_s22 = sshra.s32 %s199_s0, 4  ;;  %s201_s10 = int_to_ptr.vmem [resolvable:$true] %s200_s10  ;;  %s4098_s22 = int_to_ptr.hbm [resolvable:$true] %s4097_s22 }
  0x22   : > { %s4099_s27 = scalar_lea.hbm %s4098_s22, 1152  ;;  %s4104_s15 = scalar_lea.hbm %s4850_s1, 2304 }
  0x23   : > { %p4100_p1 = scmp.ne.s32.totalorder %s4098_s22, %s4099_s27  ;;  %p4105_p6 = scmp.lt.s32.totalorder %s4098_s22, %s4850_s1 }
  0x24   : > { %p4106_p7 = scmp.lt.s32.totalorder %s4104_s15, %s4099_s27 }
  0x25   : > { %p4102_p3 = pnand %p4101_p2, %p4100_p1 }
  0x26   : > { %p4107_p11 = por %p4106_p7, %p4105_p6 }
  0x27   : > { %p4103_p4 = pneg %p4102_p3 }
  0x29   : > { %p4108_p12 = pnand %p4107_p11, %p4103_p4 }
  0x2b   : > { %4111 = shalt.err (!%p4108_p12)
}
  0x2c   : > { %s4214_s24 = smov 192   ;;  %s4215_s30 = smov 12  }
  0x2d   : > { %s4862_s5 = smov 384   ;;  %212 = sbr.rel (%p4295_p10) target bundleno = 2015 (0x7df), region = 36 }
  0x2e   : > { %3906 = dma.hbm_to_vmem [thread:$0]  (!%p4320_p0), %s199_s0, 18432, %s201_s10, %s189_s9, %s4862_s5, %s4214_s24, %s4215_s30  }
  0x32   : > { %4172 = dma.done.wait (%p62_p5), [#allocation4], 384  }
  0x33   : > { %4174 = vsyncadd (%p62_p5), [#allocation4], 4294966912  ;;  %s219_s7 = sand.u32 1, %s4266_s19   ;;  %s221_s8 = sand.u32 1, %s4197_s16  }
  0x34   : > { %s3874_s11 = smul.u32 1152, %s221_s8  ;;  %s220_s13 = scalar_lea.sflag [#allocation7], %s219_s7 }
  0x36   : > { %s4356_s14 = scalar_lea.vmem [#allocation6], %s3874_s11 }
  0x37   : > { %4176 = dma.done.wait (%p4290_p8), %s220_s13, 18432  }
  0x38   : > { %4178 = vsyncadd (%p4290_p8), %s220_s13, 4294948864 }
  0x39   : > { %4180 = dma.done.wait (%p62_p5), [#allocation7], 7296  }
  0x3a   : > { %4182 = vsyncadd (%p62_p5), [#allocation7], 4294960000 }
  0x3b   : > { %4184 = dma.done.wait (%p62_p5), [#allocation10], 1792  }
  0x3c   : > { %4186 = vsyncadd (%p62_p5), [#allocation10], 4294965504  ;;  %v2837_v0 = vld [vmem:[%s4356_s14 + $0xa8] sm:$0xf]  ;;  %v3675_v1 = vld [vmem:[%s4356_s14 + $0xb0] sm:$0xf0] }
  0x3d   : > { %v2933_v2 = vld [vmem:[%s4356_s14 + $0x168] sm:$0xf]  ;;  %v2838_v3 = vor.u32 %v3675_v1, %v2837_v0  ;;  %v3699_v4 = vld [vmem:[%s4356_s14 + $0x170] sm:$0xf0]  ;;  %v2825_v5 = vld [vmem:[%s4356_s14 + $0x90] sm:$0xf] }
  0x3e   : > { %v3672_v6 = vld [vmem:[%s4356_s14 + $0x98] sm:$0xf0]  ;;  %v2934_v7 = vor.u32 %v3699_v4, %v2933_v2  ;;  %v2921_v8 = vld [vmem:[%s4356_s14 + $0x150] sm:$0xf]  ;;  %v2813_v11 = vld [vmem:[%s4356_s14 + $0x78] sm:$0xf] }
  0x3f   : > { %v3696_v9 = vld [vmem:[%s4356_s14 + $0x158] sm:$0xf0]  ;;  %1245 = vmatpush.bf16.msra.mxu0 %v2838_v3  ;;  %v2826_v10 = vor.u32 %v3672_v6, %v2825_v5  ;;  %v3669_v12 = vld [vmem:[%s4356_s14 + $0x80] sm:$0xf0]  ;;  %v3029_v14 = vld [vmem:[%s4356_s14 + $0x228] sm:$0xf] }
  0x40   : > { %1258 = vmatpush.bf16.msra.mxu1 %v2934_v7  ;;  %v2922_v13 = vor.u32 %v3696_v9, %v2921_v8  ;;  %v3723_v15 = vld [vmem:[%s4356_s14 + $0x230] sm:$0xf0]  ;;  %v3125_v16 = vld [vmem:[%s4356_s14 + $0x2e8] sm:$0xf]  ;;  %v2909_v17 = vld [vmem:[%s4356_s14 + $0x138] sm:$0xf]  ;;  %v2814_v23 = vor.u32 %v3669_v12, %v2813_v11 }
  0x41   : > { %v3693_v18 = vld [vmem:[%s4356_s14 + $0x140] sm:$0xf0]  ;;  %v3030_v19 = vor.u32 %v3723_v15, %v3029_v14  ;;  %v3747_v20 = vld [vmem:[%s4356_s14 + $0x2f0] sm:$0xf0]  ;;  %v3017_v22 = vld [vmem:[%s4356_s14 + $0x210] sm:$0xf] }
  0x42   : > { %v3126_v21 = vor.u32 %v3747_v20, %v3125_v16  ;;  %v3720_v24 = vld [vmem:[%s4356_s14 + $0x218] sm:$0xf0]  ;;  %v3113_v25 = vld [vmem:[%s4356_s14 + $0x2d0] sm:$0xf]  ;;  %v2910_v27 = vor.u32 %v3693_v18, %v2909_v17  ;;  %v2801_v28 = vld [vmem:[%s4356_s14 + $0x60] sm:$0xf] }
  0x43   : > { %1246 = vmatpush.bf16.msra.mxu0 %v2826_v10  ;;  %1271 = vmatpush.bf16.msra.mxu2 %v3030_v19  ;;  %v3744_v26 = vld [vmem:[%s4356_s14 + $0x2d8] sm:$0xf0]  ;;  %v3666_v29 = vld [vmem:[%s4356_s14 + $0x68] sm:$0xf0]  ;;  %v2897_v30 = vld [vmem:[%s4356_s14 + $0x120] sm:$0xf]  ;;  %v3018_v31 = vor.u32 %v3720_v24, %v3017_v22 }
  0x44   : > { %1259 = vmatpush.bf16.msra.mxu1 %v2922_v13  ;;  %1284 = vmatpush.bf16.msra.mxu3 %v3126_v21  ;;  %v3114_v32 = vor.u32 %v3744_v26, %v3113_v25  ;;  %v3690_v33 = vld [vmem:[%s4356_s14 + $0x128] sm:$0xf0]  ;;  %v3005_v34 = vld [vmem:[%s4356_s14 + $0x1f8] sm:$0xf]  ;;  %v3717_v35 = vld [vmem:[%s4356_s14 + $0x200] sm:$0xf0]  ;;  %v2802_v38 = vor.u32 %v3666_v29, %v2801_v28 }
  0x45   : > { %v3101_v36 = vld [vmem:[%s4356_s14 + $0x2b8] sm:$0xf]  ;;  %v3741_v37 = vld [vmem:[%s4356_s14 + $0x2c0] sm:$0xf0]  ;;  %v2789_v39 = vld [vmem:[%s4356_s14 + $0x48] sm:$0xf]  ;;  %v3006_v41 = vor.u32 %v3717_v35, %v3005_v34  ;;  %v2898_v42 = vor.u32 %v3690_v33, %v2897_v30 }
  0x46   : > { %v3663_v40 = vld [vmem:[%s4356_s14 + $0x50] sm:$0xf0]  ;;  %v2885_v43 = vld [vmem:[%s4356_s14 + $0x108] sm:$0xf]  ;;  %v3102_v44 = vor.u32 %v3741_v37, %v3101_v36  ;;  %v2993_v45 = vld [vmem:[%s4356_s14 + $0x1e0] sm:$0xf] }
  0x47   : > { %1247 = vmatpush.bf16.msra.mxu0 %v2814_v23  ;;  %1272 = vmatpush.bf16.msra.mxu2 %v3018_v31  ;;  %v3714_v46 = vld [vmem:[%s4356_s14 + $0x1e8] sm:$0xf0]  ;;  %v3687_v47 = vld [vmem:[%s4356_s14 + $0x110] sm:$0xf0]  ;;  %v3089_v48 = vld [vmem:[%s4356_s14 + $0x2a0] sm:$0xf]  ;;  %v2790_v50 = vor.u32 %v3663_v40, %v2789_v39 }
  0x48   : > { %1260 = vmatpush.bf16.msra.mxu1 %v2910_v27  ;;  %1285 = vmatpush.bf16.msra.mxu3 %v3114_v32  ;;  %v3738_v49 = vld [vmem:[%s4356_s14 + $0x2a8] sm:$0xf0]  ;;  %v2777_v51 = vld [vmem:[%s4356_s14 + $0x30] sm:$0xf]  ;;  %v3660_v52 = vld [vmem:[%s4356_s14 + $0x38] sm:$0xf0]  ;;  %v2994_v53 = vor.u32 %v3714_v46, %v2993_v45  ;;  %v2886_v54 = vor.u32 %v3687_v47, %v2885_v43 }
  0x49   : > { %v2873_v55 = vld [vmem:[%s4356_s14 + $0xf0] sm:$0xf]  ;;  %v3090_v56 = vor.u32 %v3738_v49, %v3089_v48  ;;  %v2981_v57 = vld [vmem:[%s4356_s14 + $0x1c8] sm:$0xf]  ;;  %v3711_v58 = vld [vmem:[%s4356_s14 + $0x1d0] sm:$0xf0]  ;;  %v2778_v62 = vor.u32 %v3660_v52, %v2777_v51 }
  0x4a   : > { %v3684_v59 = vld [vmem:[%s4356_s14 + $0xf8] sm:$0xf0]  ;;  %v3077_v60 = vld [vmem:[%s4356_s14 + $0x288] sm:$0xf]  ;;  %v3735_v61 = vld [vmem:[%s4356_s14 + $0x290] sm:$0xf0]  ;;  %v2982_v1 = vor.u32 %v3711_v58, %v2981_v57 }
  0x4b   : > { %1248 = vmatpush.bf16.msra.mxu0 %v2802_v38  ;;  %1273 = vmatpush.bf16.msra.mxu2 %v3006_v41  ;;  %v2765_v63 = vld [vmem:[%s4356_s14 + $0x18] sm:$0xf]  ;;  %v3657_v0 = vld [vmem:[%s4356_s14 + $0x20] sm:$0xf0]  ;;  %v2874_v2 = vor.u32 %v3684_v59, %v2873_v55  ;;  %v3078_v4 = vor.u32 %v3735_v61, %v3077_v60  ;;  %v2969_v5 = vld [vmem:[%s4356_s14 + $0x1b0] sm:$0xf] }
  0x4c   : > { %1261 = vmatpush.bf16.msra.mxu1 %v2898_v42  ;;  %1286 = vmatpush.bf16.msra.mxu3 %v3102_v44  ;;  %v2861_v3 = vld [vmem:[%s4356_s14 + $0xd8] sm:$0xf]  ;;  %v3708_v6 = vld [vmem:[%s4356_s14 + $0x1b8] sm:$0xf0]  ;;  %v3681_v7 = vld [vmem:[%s4356_s14 + $0xe0] sm:$0xf0]  ;;  %v2766_v10 = vor.u32 %v3657_v0, %v2765_v63 }
  0x4d   : > { %v3065_v8 = vld [vmem:[%s4356_s14 + $0x270] sm:$0xf]  ;;  %v3732_v9 = vld [vmem:[%s4356_s14 + $0x278] sm:$0xf0]  ;;  %v2753_v11 = vld [vmem:[%s4356_s14] sm:$0xf]  ;;  %v2970_v14 = vor.u32 %v3708_v6, %v2969_v5  ;;  %v2862_v15 = vor.u32 %v3681_v7, %v2861_v3 }
  0x4e   : > { %v3654_v12 = vld [vmem:[%s4356_s14 + $0x8] sm:$0xf0]  ;;  %v2849_v13 = vld [vmem:[%s4356_s14 + $0xc0] sm:$0xf]  ;;  %v3066_v17 = vor.u32 %v3732_v9, %v3065_v8  ;;  %v2957_v18 = vld [vmem:[%s4356_s14 + $0x198] sm:$0xf] }
  0x4f   : > { %1249 = vmatpush.bf16.msra.mxu0 %v2790_v50  ;;  %1274 = vmatpush.bf16.msra.mxu2 %v2994_v53  ;;  %v3678_v16 = vld [vmem:[%s4356_s14 + $0xc8] sm:$0xf0]  ;;  %v3705_v19 = vld [vmem:[%s4356_s14 + $0x1a0] sm:$0xf0]  ;;  %v3221_v20 = vld [vmem:[%s4356_s14 + $0x3a8] sm:$0xf]  ;;  %v2754_v26 = vor.u32 %v3654_v12, %v2753_v11 }
  0x50   : > { %1262 = vmatpush.bf16.msra.mxu1 %v2886_v54  ;;  %1287 = vmatpush.bf16.msra.mxu3 %v3090_v56  ;;  %v3771_v21 = vld [vmem:[%s4356_s14 + $0x3b0] sm:$0xf0]  ;;  %v3317_v22 = vld [vmem:[%s4356_s14 + $0x468] sm:$0xf]  ;;  %v3053_v24 = vld [vmem:[%s4356_s14 + $0x258] sm:$0xf]  ;;  %v2958_v27 = vor.u32 %v3705_v19, %v2957_v18  ;;  %v2850_v29 = vor.u32 %v3678_v16, %v2849_v13 }
  0x51   : > { %v3795_v23 = vld [vmem:[%s4356_s14 + $0x470] sm:$0xf0]  ;;  %v3729_v25 = vld [vmem:[%s4356_s14 + $0x260] sm:$0xf0]  ;;  %v3209_v28 = vld [vmem:[%s4356_s14 + $0x390] sm:$0xf]  ;;  %v3222_v30 = vor.u32 %v3771_v21, %v3221_v20 }
  0x52   : > { %v3768_v31 = vld [vmem:[%s4356_s14 + $0x398] sm:$0xf0]  ;;  %v2945_v32 = vld [vmem:[%s4356_s14 + $0x180] sm:$0xf]  ;;  %v3702_v33 = vld [vmem:[%s4356_s14 + $0x188] sm:$0xf0]  ;;  %v3318_v34 = vor.u32 %v3795_v23, %v3317_v22  ;;  %v3054_v36 = vor.u32 %v3729_v25, %v3053_v24 }
  0x53   : > { %1250 = vmatpush.bf16.msra.mxu0 %v2778_v62  ;;  %1275 = vmatpush.bf16.msra.mxu2 %v2982_v1  ;;  %v3305_v35 = vld [vmem:[%s4356_s14 + $0x450] sm:$0xf]  ;;  %v3674_v37 = vld [vmem:[%s4356_s14 + $0xac] sm:$0xf]  ;;  %v2839_v38 = vld [vmem:[%s4356_s14 + $0xb4] sm:$0xf0]  ;;  %v2946_v42 = vor.u32 %v3702_v33, %v2945_v32  ;;  %v3210_v46 = vor.u32 %v3768_v31, %v3209_v28 }
  0x54   : > { %1263 = vmatpush.bf16.msra.mxu1 %v2874_v2  ;;  %1288 = vmatpush.bf16.msra.mxu3 %v3078_v4  ;;  %v3792_v39 = vld [vmem:[%s4356_s14 + $0x458] sm:$0xf0]  ;;  %v3041_v40 = vld [vmem:[%s4356_s14 + $0x240] sm:$0xf]  ;;  %v3726_v41 = vld [vmem:[%s4356_s14 + $0x248] sm:$0xf0]  ;;  %v2842_v48 = vor.u32 %v3674_v37, %v2839_v38 }
  0x55   : > { %v3698_v43 = vld [vmem:[%s4356_s14 + $0x16c] sm:$0xf]  ;;  %v2935_v44 = vld [vmem:[%s4356_s14 + $0x174] sm:$0xf0]  ;;  %v3306_v49 = vor.u32 %v3792_v39, %v3305_v35  ;;  %v3765_v50 = vld [vmem:[%s4356_s14 + $0x380] sm:$0xf0]  ;;  %v3042_v51 = vor.u32 %v3726_v41, %v3041_v40 }
  0x56   : > { %v256_v45 = vld [vmem:[#allocation3] sm:$0xff]  ;;  %v3197_v47 = vld [vmem:[%s4356_s14 + $0x378] sm:$0xf]  ;;  %v3671_v52 = vld [vmem:[%s4356_s14 + $0x94] sm:$0xf]  ;;  %v2938_v56 = vor.u32 %v3698_v43, %v2935_v44 }
  0x57   : > { %1251 = vmatpush.bf16.msra.mxu0 %v2766_v10  ;;  %1276 = vmatpush.bf16.msra.mxu2 %v2970_v14  ;;  %262 = vst [vmem:[#allocation1] ss:$2 sm:$0xff] %v256_v45  ;;  %v2827_v53 = vld [vmem:[%s4356_s14 + $0x9c] sm:$0xf0]  ;;  %v3293_v54 = vld [vmem:[%s4356_s14 + $0x438] sm:$0xf]  ;;  %v3198_v60 = vor.u32 %v3765_v50, %v3197_v47 }
  0x58   : > { %1264 = vmatpush.bf16.msra.mxu1 %v2862_v15  ;;  %1289 = vmatpush.bf16.msra.mxu3 %v3066_v17  ;;  %v3789_v55 = vld [vmem:[%s4356_s14 + $0x440] sm:$0xf0]  ;;  %v3185_v57 = vld [vmem:[%s4356_s14 + $0x360] sm:$0xf]  ;;  %v3695_v58 = vld [vmem:[%s4356_s14 + $0x154] sm:$0xf]  ;;  %v2830_v63 = vor.u32 %v3671_v52, %v2827_v53 }
  0x59   : > { %v2923_v59 = vld [vmem:[%s4356_s14 + $0x15c] sm:$0xf0]  ;;  %v3762_v61 = vld [vmem:[%s4356_s14 + $0x368] sm:$0xf0]  ;;  %v257_v0 = vld [vmem:[#allocation3 + $0x8] sm:$0xff]  ;;  %v3294_v1 = vor.u32 %v3789_v55, %v3293_v54 }
  0x5a   : > { %v3281_v62 = vld [vmem:[%s4356_s14 + $0x420] sm:$0xf]  ;;  %v3668_v2 = vld [vmem:[%s4356_s14 + $0x7c] sm:$0xf]  ;;  %v2815_v3 = vld [vmem:[%s4356_s14 + $0x84] sm:$0xf0]  ;;  %v2926_v5 = vor.u32 %v3695_v58, %v2923_v59  ;;  %v3186_v8 = vor.u32 %v3762_v61, %v3185_v57 }
  0x5b   : > { %1252 = vmatpush.bf16.msra.mxu0 %v2754_v26  ;;  %1277 = vmatpush.bf16.msra.mxu2 %v2958_v27  ;;  %264 = vst [vmem:[#allocation1 + $0x10] ss:$2 sm:$0xff] %v257_v0  ;;  %v3786_v4 = vld [vmem:[%s4356_s14 + $0x428] sm:$0xf0]  ;;  %v3692_v6 = vld [vmem:[%s4356_s14 + $0x13c] sm:$0xf]  ;;  %v2818_v12 = vor.u32 %v3668_v2, %v2815_v3 }
  0x5c   : > { %1265 = vmatpush.bf16.msra.mxu1 %v2850_v29  ;;  %1290 = vmatpush.bf16.msra.mxu3 %v3054_v36  ;;  %v2911_v7 = vld [vmem:[%s4356_s14 + $0x144] sm:$0xf0]  ;;  %v3282_v15 = vor.u32 %v3786_v4, %v3281_v62  ;;  %v3759_v16 = vld [vmem:[%s4356_s14 + $0x350] sm:$0xf0]  ;;  %v3665_v17 = vld [vmem:[%s4356_s14 + $0x64] sm:$0xf] }
  0x5d   : > { %v3173_v11 = vld [vmem:[%s4356_s14 + $0x348] sm:$0xf]  ;;  %v2803_v18 = vld [vmem:[%s4356_s14 + $0x6c] sm:$0xf0]  ;;  %v3783_v20 = vld [vmem:[%s4356_s14 + $0x410] sm:$0xf0]  ;;  %v2914_v21 = vor.u32 %v3692_v6, %v2911_v7 }
  0x5e   : > { %v267_v9 = vld.sshfl [vmem:[#allocation1] sm:$0xff pattern:$0x75316420]  ;;  %v268_v10 = vld.sshfl [vmem:[#allocation1 + $0x8] sm:$0xff pattern:$0x75316420]  ;;  %v3174_v25 = vor.u32 %v3759_v16, %v3173_v11  ;;  %v2806_v26 = vor.u32 %v3665_v17, %v2803_v18 }
  0x5f   : > { %1297 = vmatpush.bf16.msrb.mxu0 %v3222_v30  ;;  %1278 = vmatpush.bf16.msra.mxu2 %v2946_v42  ;;  %v4463_v13 = vpack.c.bf16 %v267_v9, %v267_v9  ;;  %v4465_v14 = vpack.c.bf16 %v268_v10, %v268_v10  ;;  %v3269_v19 = vld [vmem:[%s4356_s14 + $0x408] sm:$0xf]  ;;  %v3161_v22 = vld [vmem:[%s4356_s14 + $0x330] sm:$0xf]  ;;  %v3689_v23 = vld [vmem:[%s4356_s14 + $0x124] sm:$0xf] }
  0x60   : > { %1310 = vmatpush.bf16.msrb.mxu1 %v3318_v34  ;;  %1291 = vmatpush.bf16.msra.mxu3 %v3042_v51  ;;  %v2899_v24 = vld [vmem:[%s4356_s14 + $0x12c] sm:$0xf0]  ;;  %v3270_v29 = vor.u32 %v3783_v20, %v3269_v19  ;;  %v3756_v30 = vld [vmem:[%s4356_s14 + $0x338] sm:$0xf0]  ;;  %v3662_v32 = vld [vmem:[%s4356_s14 + $0x4c] sm:$0xf] }
  0x61   : > { %1253 = vmatmul.bf16.vlgmr.msra.gmra.mxu0 %v4463_v13  ;;  %1266 = vmatmul.bf16.vlgmr.msra.gmra.mxu1 %v4465_v14  ;;  %v2791_v33 = vld [vmem:[%s4356_s14 + $0x54] sm:$0xf0]  ;;  %v3257_v35 = vld [vmem:[%s4356_s14 + $0x3f0] sm:$0xf]  ;;  %v3780_v36 = vld [vmem:[%s4356_s14 + $0x3f8] sm:$0xf0]  ;;  %v2902_v37 = vor.u32 %v3689_v23, %v2899_v24  ;;  %v3162_v41 = vor.u32 %v3756_v30, %v3161_v22 }
  0x62   : > { %v269_v27 = vld.sshfl [vmem:[#allocation1 + $0x10] sm:$0xff pattern:$0x75316420]  ;;  %v270_v28 = vld.sshfl [vmem:[#allocation1 + $0x18] sm:$0xff pattern:$0x75316420]  ;;  %v2794_v43 = vor.u32 %v3662_v32, %v2791_v33  ;;  %v3258_v44 = vor.u32 %v3780_v36, %v3257_v35 }
  0x63   : > { %1298 = vmatpush.bf16.msrb.mxu0 %v3210_v46  ;;  %1323 = vmatpush.bf16.msrb.mxu2 %v2842_v48  ;;  %v4478_v31 = vpack.c.bf16 %v269_v27, %v269_v27  ;;  %v4482_v34 = vpack.c.bf16 %v270_v28, %v270_v28  ;;  %v258_v38 = vld [vmem:[#allocation3 + $0x10] sm:$0xff]  ;;  %v3686_v39 = vld [vmem:[%s4356_s14 + $0x10c] sm:$0xf]  ;;  %v3753_v45 = vld [vmem:[%s4356_s14 + $0x320] sm:$0xf0] }
  0x64   : > { %1311 = vmatpush.bf16.msrb.mxu1 %v3306_v49  ;;  %1336 = vmatpush.bf16.msrb.mxu3 %v2938_v56  ;;  %v2887_v40 = vld [vmem:[%s4356_s14 + $0x114] sm:$0xf0]  ;;  %266 = vst [vmem:[#allocation1 + $0x20] ss:$2 sm:$0xff] %v258_v38  ;;  %v3659_v46 = vld [vmem:[%s4356_s14 + $0x34] sm:$0xf] }
  0x65   : > { %1279 = vmatmul.bf16.vlgmr.msra.gmra.mxu2 %v4478_v31  ;;  %1292 = vmatmul.bf16.vlgmr.msra.gmra.mxu3 %v4482_v34  ;;  %v3149_v42 = vld [vmem:[%s4356_s14 + $0x318] sm:$0xf]  ;;  %v2779_v47 = vld [vmem:[%s4356_s14 + $0x3c] sm:$0xf0]  ;;  %v3777_v49 = vld [vmem:[%s4356_s14 + $0x3e0] sm:$0xf0]  ;;  %v2890_v50 = vor.u32 %v3686_v39, %v2887_v40 }
  0x66   : > { %v3245_v48 = vld [vmem:[%s4356_s14 + $0x3d8] sm:$0xf]  ;;  %v3683_v51 = vld [vmem:[%s4356_s14 + $0xf4] sm:$0xf]  ;;  %v2875_v52 = vld [vmem:[%s4356_s14 + $0xfc] sm:$0xf0]  ;;  %v3150_v53 = vor.u32 %v3753_v45, %v3149_v42  ;;  %v2782_v57 = vor.u32 %v3659_v46, %v2779_v47 }
  0x67   : > { %1299 = vmatpush.bf16.msrb.mxu0 %v3198_v60  ;;  %1324 = vmatpush.bf16.msrb.mxu2 %v2830_v63  ;;  %v3137_v54 = vld [vmem:[%s4356_s14 + $0x300] sm:$0xf]  ;;  %v3750_v55 = vld [vmem:[%s4356_s14 + $0x308] sm:$0xf0]  ;;  %v3246_v58 = vor.u32 %v3777_v49, %v3245_v48  ;;  %v3656_v60 = vld [vmem:[%s4356_s14 + $0x1c] sm:$0xf] }
  0x68   : > { %1312 = vmatpush.bf16.msrb.mxu1 %v3294_v1  ;;  %1337 = vmatpush.bf16.msrb.mxu3 %v2926_v5  ;;  %v3233_v56 = vld [vmem:[%s4356_s14 + $0x3c0] sm:$0xf]  ;;  %v3774_v59 = vld [vmem:[%s4356_s14 + $0x3c8] sm:$0xf0]  ;;  %v2767_v61 = vld [vmem:[%s4356_s14 + $0x24] sm:$0xf0]  ;;  %v2878_v1 = vor.u32 %v3683_v51, %v2875_v52  ;;  %v3138_v5 = vor.u32 %v3750_v55, %v3137_v54 }
  0x69   : > { %v3722_v62 = vld [vmem:[%s4356_s14 + $0x22c] sm:$0xf]  ;;  %v3031_v63 = vld [vmem:[%s4356_s14 + $0x234] sm:$0xf0]  ;;  %v3680_v3 = vld [vmem:[%s4356_s14 + $0xdc] sm:$0xf]  ;;  %v2770_v6 = vor.u32 %v3656_v60, %v2767_v61  ;;  %v3234_v11 = vor.u32 %v3774_v59, %v3233_v56 }
  0x6a   : > { %v3746_v0 = vld [vmem:[%s4356_s14 + $0x2ec] sm:$0xf]  ;;  %v3127_v2 = vld [vmem:[%s4356_s14 + $0x2f4] sm:$0xf0]  ;;  %v2863_v4 = vld [vmem:[%s4356_s14 + $0xe4] sm:$0xf0] }
  0x6b   : > { %1300 = vmatpush.bf16.msrb.mxu0 %v3186_v8  ;;  %1325 = vmatpush.bf16.msrb.mxu2 %v2818_v12  ;;  %v3719_v7 = vld [vmem:[%s4356_s14 + $0x214] sm:$0xf]  ;;  %v3019_v8 = vld [vmem:[%s4356_s14 + $0x21c] sm:$0xf0]  ;;  %v3653_v10 = vld [vmem:[%s4356_s14 + $0x4] sm:$0xf]  ;;  %v3034_v12 = vor.u32 %v3722_v62, %v3031_v63  ;;  %v3130_v17 = vor.u32 %v3746_v0, %v3127_v2  ;;  %v2866_v19 = vor.u32 %v3680_v3, %v2863_v4 }
  0x6c   : > { %1313 = vmatpush.bf16.msrb.mxu1 %v3282_v15  ;;  %1338 = vmatpush.bf16.msrb.mxu3 %v2914_v21  ;;  %v271_v9 = vld.sshfl [vmem:[#allocation1 + $0x20] sm:$0xff pattern:$0x75316420]  ;;  %v272_v15 = vld.sshfl [vmem:[#allocation1 + $0x28] sm:$0xff pattern:$0x75316420]  ;;  %v3022_v30 = vor.u32 %v3719_v7, %v3019_v8 }
  0x6d   : > { %v2755_v16 = vld [vmem:[%s4356_s14 + $0xc] sm:$0xf0]  ;;  %v3743_v18 = vld [vmem:[%s4356_s14 + $0x2d4] sm:$0xf]  ;;  %v3770_v20 = vld [vmem:[%s4356_s14 + $0x3ac] sm:$0xf]  ;;  %v4518_v23 = vpack.c.bf16 %v271_v9, %v271_v9 }
  0x6e   : > { %v3223_v21 = vld [vmem:[%s4356_s14 + $0x3b4] sm:$0xf0]  ;;  %v3115_v22 = vld [vmem:[%s4356_s14 + $0x2dc] sm:$0xf0]  ;;  %v3677_v24 = vld [vmem:[%s4356_s14 + $0xc4] sm:$0xf]  ;;  %v2758_v27 = vor.u32 %v3653_v10, %v2755_v16 }
  0x6f   : > { %1301 = vmatpush.bf16.msrb.mxu0 %v3174_v25  ;;  %1326 = vmatpush.bf16.msrb.mxu2 %v2806_v26  ;;  %v2851_v25 = vld [vmem:[%s4356_s14 + $0xcc] sm:$0xf0]  ;;  %v4522_v26 = vpack.c.bf16 %v272_v15, %v272_v15  ;;  %v3794_v28 = vld [vmem:[%s4356_s14 + $0x46c] sm:$0xf]  ;;  %v3716_v32 = vld [vmem:[%s4356_s14 + $0x1fc] sm:$0xf]  ;;  %v3226_v33 = vor.u32 %v3770_v20, %v3223_v21  ;;  %v3118_v35 = vor.u32 %v3743_v18, %v3115_v22 }
  0x70   : > { %1314 = vmatpush.bf16.msrb.mxu1 %v3270_v29  ;;  %1339 = vmatpush.bf16.msrb.mxu3 %v2902_v37  ;;  %v3319_v29 = vld [vmem:[%s4356_s14 + $0x474] sm:$0xf0]  ;;  %v3007_v36 = vld [vmem:[%s4356_s14 + $0x204] sm:$0xf0]  ;;  %v2854_v37 = vor.u32 %v3677_v24, %v2851_v25  ;;  %v3767_v38 = vld [vmem:[%s4356_s14 + $0x394] sm:$0xf] }
  0x71   : > { %v3211_v39 = vld [vmem:[%s4356_s14 + $0x39c] sm:$0xf0]  ;;  %v3740_v40 = vld [vmem:[%s4356_s14 + $0x2bc] sm:$0xf]  ;;  %v3322_v42 = vor.u32 %v3794_v28, %v3319_v29  ;;  %v3010_v45 = vor.u32 %v3716_v32, %v3007_v36  ;;  %v3713_v46 = vld [vmem:[%s4356_s14 + $0x1e4] sm:$0xf] }
  0x72   : > { %v3214_v47 = vor.u32 %v3767_v38, %v3211_v39  ;;  %v2995_v49 = vld [vmem:[%s4356_s14 + $0x1ec] sm:$0xf0]  ;;  %v3199_v51 = vld [vmem:[%s4356_s14 + $0x384] sm:$0xf0]  ;;  %v3737_v52 = vld [vmem:[%s4356_s14 + $0x2a4] sm:$0xf] }
  0x73   : > { %1302 = vmatpush.bf16.msrb.mxu0 %v3162_v41  ;;  %1327 = vmatpush.bf16.msrb.mxu2 %v2794_v43  ;;  %v3103_v41 = vld [vmem:[%s4356_s14 + $0x2c4] sm:$0xf0]  ;;  %v3791_v43 = vld [vmem:[%s4356_s14 + $0x454] sm:$0xf]  ;;  %v3788_v55 = vld [vmem:[%s4356_s14 + $0x43c] sm:$0xf] }
  0x74   : > { %1315 = vmatpush.bf16.msrb.mxu1 %v3258_v44  ;;  %1340 = vmatpush.bf16.msrb.mxu3 %v2890_v50  ;;  %v3307_v44 = vld [vmem:[%s4356_s14 + $0x45c] sm:$0xf0]  ;;  %v3106_v48 = vor.u32 %v3740_v40, %v3103_v41  ;;  %v3764_v50 = vld [vmem:[%s4356_s14 + $0x37c] sm:$0xf]  ;;  %v3295_v56 = vld [vmem:[%s4356_s14 + $0x444] sm:$0xf0] }
  0x75   : > { %v3310_v54 = vor.u32 %v3791_v43, %v3307_v44  ;;  %v3202_v59 = vor.u32 %v3764_v50, %v3199_v51  ;;  %v2983_v61 = vld [vmem:[%s4356_s14 + $0x1d4] sm:$0xf0]  ;;  %v3761_v62 = vld [vmem:[%s4356_s14 + $0x364] sm:$0xf]  ;;  %v3187_v63 = vld [vmem:[%s4356_s14 + $0x36c] sm:$0xf0]  ;;  %v3298_v2 = vor.u32 %v3788_v55, %v3295_v56 }
  0x76   : > { %v3734_v0 = vld [vmem:[%s4356_s14 + $0x28c] sm:$0xf]  ;;  %v3785_v3 = vld [vmem:[%s4356_s14 + $0x424] sm:$0xf]  ;;  %v3283_v4 = vld [vmem:[%s4356_s14 + $0x42c] sm:$0xf0]  ;;  %v3190_v7 = vor.u32 %v3761_v62, %v3187_v63 }
  0x77   : > { %1303 = vmatpush.bf16.msrb.mxu0 %v3150_v53  ;;  %1328 = vmatpush.bf16.msrb.mxu2 %v2782_v57  ;;  %v3091_v53 = vld [vmem:[%s4356_s14 + $0x2ac] sm:$0xf0]  ;;  %v2998_v57 = vor.u32 %v3713_v46, %v2995_v49  ;;  %v2971_v9 = vld [vmem:[%s4356_s14 + $0x1bc] sm:$0xf0]  ;;  %v3758_v10 = vld [vmem:[%s4356_s14 + $0x34c] sm:$0xf]  ;;  %v3286_v16 = vor.u32 %v3785_v3, %v3283_v4 }
  0x78   : > { %1316 = vmatpush.bf16.msrb.mxu1 %v3246_v58  ;;  %1341 = vmatpush.bf16.msrb.mxu3 %v2878_v1  ;;  %v3710_v58 = vld [vmem:[%s4356_s14 + $0x1cc] sm:$0xf]  ;;  %v3094_v60 = vor.u32 %v3737_v52, %v3091_v53  ;;  %v3079_v1 = vld [vmem:[%s4356_s14 + $0x294] sm:$0xf0]  ;;  %v3067_v15 = vld [vmem:[%s4356_s14 + $0x27c] sm:$0xf0] }
  0x79   : > { %v3082_v8 = vor.u32 %v3734_v0, %v3079_v1  ;;  %v3271_v18 = vld [vmem:[%s4356_s14 + $0x414] sm:$0xf0]  ;;  %v3704_v20 = vld [vmem:[%s4356_s14 + $0x19c] sm:$0xf]  ;;  %v2959_v24 = vld [vmem:[%s4356_s14 + $0x1a4] sm:$0xf0] }
  0x7a   : > { %v3755_v25 = vld [vmem:[%s4356_s14 + $0x334] sm:$0xf]  ;;  %v3728_v28 = vld [vmem:[%s4356_s14 + $0x25c] sm:$0xf]  ;;  %v3055_v29 = vld [vmem:[%s4356_s14 + $0x264] sm:$0xf0] }
  0x7b   : > { %1304 = vmatpush.bf16.msrb.mxu0 %v3138_v5  ;;  %1329 = vmatpush.bf16.msrb.mxu2 %v2770_v6  ;;  %v2986_v5 = vor.u32 %v3710_v58, %v2983_v61  ;;  %v3707_v6 = vld [vmem:[%s4356_s14 + $0x1b4] sm:$0xf]  ;;  %v3701_v36 = vld [vmem:[%s4356_s14 + $0x184] sm:$0xf]  ;;  %v3058_v40 = vor.u32 %v3728_v28, %v3055_v29  ;;  %v3043_v41 = vld [vmem:[%s4356_s14 + $0x24c] sm:$0xf0] }
  0x7c   : > { %1317 = vmatpush.bf16.msrb.mxu1 %v3234_v11  ;;  %1342 = vmatpush.bf16.msrb.mxu3 %v2866_v19  ;;  %v3175_v11 = vld [vmem:[%s4356_s14 + $0x354] sm:$0xf0]  ;;  %v2974_v19 = vor.u32 %v3707_v6, %v2971_v9  ;;  %v3779_v32 = vld [vmem:[%s4356_s14 + $0x3f4] sm:$0xf]  ;;  %v3725_v38 = vld [vmem:[%s4356_s14 + $0x244] sm:$0xf] }
  0x7d   : > { %v3178_v21 = vor.u32 %v3758_v10, %v3175_v11  ;;  %v3151_v43 = vld [vmem:[%s4356_s14 + $0x324] sm:$0xf0]  ;;  %v2845_v44 = vld [vmem:[%s4356_s14 + $0xb0] sm:$0xf]  ;;  %v3776_v49 = vld [vmem:[%s4356_s14 + $0x3dc] sm:$0xf] }
  0x7e   : > { %1305 = vmatmul.bf16.vlgmr.msrb.gmra.mxu0 %v4518_v23  ;;  %v2941_v46 = vld [vmem:[%s4356_s14 + $0x170] sm:$0xf]  ;;  %v3247_v50 = vld [vmem:[%s4356_s14 + $0x3e4] sm:$0xf0]  ;;  %v2833_v53 = vld [vmem:[%s4356_s14 + $0x98] sm:$0xf] }
  0x7f   : > { %1349 = vmatpush.bf16.msra.mxu0 %v3034_v12  ;;  %1318 = vmatmul.bf16.vlgmr.msrb.gmra.mxu1 %v4522_v26  ;;  %v3731_v12 = vld [vmem:[%s4356_s14 + $0x274] sm:$0xf]  ;;  %v3673_v56 = vld [vmem:[%s4356_s14 + $0xa0] sm:$0xf0]  ;;  %v3139_v58 = vld [vmem:[%s4356_s14 + $0x30c] sm:$0xf0]  ;;  %v3250_v61 = vor.u32 %v3776_v49, %v3247_v50 }
  0x80   : > { %1362 = vmatpush.bf16.msra.mxu1 %v3130_v17  ;;  %1330 = vmatpush.bf16.msrb.mxu2 %v2758_v27  ;;  %v3782_v17 = vld [vmem:[%s4356_s14 + $0x40c] sm:$0xf]  ;;  %v3070_v22 = vor.u32 %v3731_v12, %v3067_v15  ;;  %v3163_v27 = vld [vmem:[%s4356_s14 + $0x33c] sm:$0xf0]  ;;  %v3037_v62 = vld [vmem:[%s4356_s14 + $0x230] sm:$0xf]  ;;  %v2834_v6 = vor.u32 %v3673_v56, %v2833_v53 }
  0x81   : > { %1343 = vmatpush.bf16.msrb.mxu3 %v2854_v37  ;;  %v2947_v37 = vld [vmem:[%s4356_s14 + $0x18c] sm:$0xf0]  ;;  %v3166_v39 = vor.u32 %v3755_v25, %v3163_v27  ;;  %v3724_v63 = vld [vmem:[%s4356_s14 + $0x238] sm:$0xf0]  ;;  %v3697_v0 = vld [vmem:[%s4356_s14 + $0x160] sm:$0xf0] }
  0x82   : > { %v2950_v51 = vor.u32 %v3701_v36, %v2947_v37  ;;  %v3773_v1 = vld [vmem:[%s4356_s14 + $0x3c4] sm:$0xf]  ;;  %v3133_v4 = vld [vmem:[%s4356_s14 + $0x2f0] sm:$0xf]  ;;  %v3670_v10 = vld [vmem:[%s4356_s14 + $0x88] sm:$0xf0] }
  0x83   : > { %1350 = vmatpush.bf16.msra.mxu0 %v3022_v30  ;;  %1331 = vmatmul.bf16.vlgmr.msrb.gmra.mxu2 %v4463_v13  ;;  %v3274_v30 = vor.u32 %v3782_v17, %v3271_v18  ;;  %v3025_v12 = vld [vmem:[%s4356_s14 + $0x218] sm:$0xf]  ;;  %v3721_v15 = vld [vmem:[%s4356_s14 + $0x220] sm:$0xf0]  ;;  %v3694_v17 = vld [vmem:[%s4356_s14 + $0x148] sm:$0xf0] }
  0x84   : > { %1375 = vmatpush.bf16.msra.mxu2 %v3226_v33  ;;  %1363 = vmatpush.bf16.msra.mxu1 %v3118_v35  ;;  %v3259_v33 = vld [vmem:[%s4356_s14 + $0x3fc] sm:$0xf0]  ;;  %v2962_v35 = vor.u32 %v3704_v20, %v2959_v24  ;;  %v3745_v20 = vld [vmem:[%s4356_s14 + $0x2e0] sm:$0xf0]  ;;  %v3026_v24 = vor.u32 %v3721_v15, %v3025_v12  ;;  %v3667_v27 = vld [vmem:[%s4356_s14 + $0x70] sm:$0xf0] }
  0x85   : > { %1388 = vmatpush.bf16.msra.mxu3 %v3322_v42  ;;  %v3752_v42 = vld [vmem:[%s4356_s14 + $0x31c] sm:$0xf]  ;;  %v3013_v28 = vld [vmem:[%s4356_s14 + $0x200] sm:$0xf]  ;;  %v3718_v29 = vld [vmem:[%s4356_s14 + $0x208] sm:$0xf0] }
  0x86   : > { %1344 = vmatmul.bf16.vlgmr.msrb.gmra.mxu3 %v4465_v14  ;;  %v3154_v52 = vor.u32 %v3752_v42, %v3151_v43  ;;  %v3742_v36 = vld [vmem:[%s4356_s14 + $0x2c8] sm:$0xf0]  ;;  %v3001_v42 = vld [vmem:[%s4356_s14 + $0x1e8] sm:$0xf]  ;;  %v3715_v43 = vld [vmem:[%s4356_s14 + $0x1f0] sm:$0xf0] }
  0x87   : > { %1351 = vmatpush.bf16.msra.mxu0 %v3010_v45  ;;  %v3676_v45 = vld [vmem:[%s4356_s14 + $0xb8] sm:$0xf0]  ;;  %v2785_v50 = vld [vmem:[%s4356_s14 + $0x38] sm:$0xf]  ;;  %v3661_v53 = vld [vmem:[%s4356_s14 + $0x40] sm:$0xf0] }
  0x88   : > { %1376 = vmatpush.bf16.msra.mxu2 %v3214_v47  ;;  %1364 = vmatpush.bf16.msra.mxu1 %v3106_v48  ;;  %v3262_v47 = vor.u32 %v3779_v32, %v3259_v33  ;;  %v3700_v48 = vld [vmem:[%s4356_s14 + $0x178] sm:$0xf0]  ;;  %v2846_v55 = vor.u32 %v3676_v45, %v2845_v44  ;;  %v3691_v32 = vld [vmem:[%s4356_s14 + $0x130] sm:$0xf0]  ;;  %v2893_v44 = vld [vmem:[%s4356_s14 + $0x110] sm:$0xf] }
  0x89   : > { %1389 = vmatpush.bf16.msra.mxu3 %v3310_v54  ;;  %v3046_v54 = vor.u32 %v3725_v38, %v3043_v41  ;;  %v2797_v38 = vld [vmem:[%s4356_s14 + $0x50] sm:$0xf]  ;;  %v3664_v41 = vld [vmem:[%s4356_s14 + $0x58] sm:$0xf0]  ;;  %v2881_v56 = vld [vmem:[%s4356_s14 + $0xf8] sm:$0xf] }
  0x8a   : > { %v3688_v45 = vld [vmem:[%s4356_s14 + $0x118] sm:$0xf0]  ;;  %v2798_v49 = vor.u32 %v3664_v41, %v2797_v38  ;;  %v2857_v12 = vld [vmem:[%s4356_s14 + $0xc8] sm:$0xf]  ;;  %v3217_v38 = vld [vmem:[%s4356_s14 + $0x398] sm:$0xf] }
  0x8b   : > { %1352 = vmatpush.bf16.msra.mxu0 %v2998_v57  ;;  %v3749_v57 = vld [vmem:[%s4356_s14 + $0x304] sm:$0xf] }
  0x8c   : > { %1377 = vmatpush.bf16.msra.mxu2 %v3202_v59  ;;  %1365 = vmatpush.bf16.msra.mxu1 %v3094_v60  ;;  %v2942_v59 = vor.u32 %v3700_v48, %v2941_v46  ;;  %v2929_v60 = vld [vmem:[%s4356_s14 + $0x158] sm:$0xf]  ;;  %v3142_v3 = vor.u32 %v3749_v57, %v3139_v58  ;;  %v3739_v48 = vld [vmem:[%s4356_s14 + $0x2b0] sm:$0xf0]  ;;  %v3685_v57 = vld [vmem:[%s4356_s14 + $0x100] sm:$0xf0] }
  0x8d   : > { %1390 = vmatpush.bf16.msra.mxu3 %v3298_v2  ;;  %v3235_v2 = vld [vmem:[%s4356_s14 + $0x3cc] sm:$0xf0]  ;;  %v2930_v9 = vor.u32 %v3697_v0, %v2929_v60  ;;  %v3736_v60 = vld [vmem:[%s4356_s14 + $0x298] sm:$0xf0]  ;;  %v2882_v0 = vor.u32 %v3685_v57, %v2881_v56  ;;  %v3763_v56 = vld [vmem:[%s4356_s14 + $0x370] sm:$0xf0] }
  0x8e   : > { %v3238_v11 = vor.u32 %v3773_v1, %v3235_v2  ;;  %v3658_v1 = vld [vmem:[%s4356_s14 + $0x28] sm:$0xf0]  ;;  %v2977_v2 = vld [vmem:[%s4356_s14 + $0x1b8] sm:$0xf]  ;;  %v3787_v57 = vld [vmem:[%s4356_s14 + $0x430] sm:$0xf0] }
  0x8f   : > { %1353 = vmatpush.bf16.msra.mxu0 %v2986_v5  ;;  %v3748_v5 = vld [vmem:[%s4356_s14 + $0x2f8] sm:$0xf0] }
  0x90   : > { %1378 = vmatpush.bf16.msra.mxu2 %v3190_v7  ;;  %1366 = vmatpush.bf16.msra.mxu1 %v3082_v8  ;;  %v2821_v7 = vld [vmem:[%s4356_s14 + $0x80] sm:$0xf]  ;;  %v3038_v8 = vor.u32 %v3724_v63, %v3037_v62  ;;  %v3134_v18 = vor.u32 %v3748_v5, %v3133_v4  ;;  %v3682_v5 = vld [vmem:[%s4356_s14 + $0xe8] sm:$0xf0] }
  0x91   : > { %1391 = vmatpush.bf16.msra.mxu3 %v3286_v16  ;;  %v2917_v16 = vld [vmem:[%s4356_s14 + $0x140] sm:$0xf] }
  0x92   : > { %v2918_v25 = vor.u32 %v3694_v17, %v2917_v16  ;;  %v2773_v62 = vld [vmem:[%s4356_s14 + $0x20] sm:$0xf]  ;;  %v3679_v17 = vld [vmem:[%s4356_s14 + $0xd0] sm:$0xf0] }
  0x93   : > { %1354 = vmatpush.bf16.msra.mxu0 %v2974_v19  ;;  %v3121_v19 = vld [vmem:[%s4356_s14 + $0x2d8] sm:$0xf]  ;;  %v2869_v4 = vld [vmem:[%s4356_s14 + $0xe0] sm:$0xf] }
  0x94   : > { %1379 = vmatpush.bf16.msra.mxu2 %v3178_v21  ;;  %1367 = vmatpush.bf16.msra.mxu1 %v3070_v22  ;;  %v2822_v21 = vor.u32 %v3670_v10, %v2821_v7  ;;  %v2809_v22 = vld [vmem:[%s4356_s14 + $0x68] sm:$0xf]  ;;  %v3122_v33 = vor.u32 %v3745_v20, %v3121_v19  ;;  %v3073_v7 = vld [vmem:[%s4356_s14 + $0x278] sm:$0xf]  ;;  %v2870_v16 = vor.u32 %v3682_v5, %v2869_v4  ;;  %v3706_v19 = vld [vmem:[%s4356_s14 + $0x1a8] sm:$0xf0] }
  0x95   : > { %1392 = vmatpush.bf16.msra.mxu3 %v3274_v30  ;;  %v2905_v30 = vld [vmem:[%s4356_s14 + $0x128] sm:$0xf]  ;;  %v2810_v37 = vor.u32 %v3667_v27, %v2809_v22  ;;  %v3229_v20 = vld [vmem:[%s4356_s14 + $0x3b0] sm:$0xf]  ;;  %v3061_v27 = vld [vmem:[%s4356_s14 + $0x260] sm:$0xf] }
  0x96   : > { %v2761_v10 = vld [vmem:[%s4356_s14 + $0x8] sm:$0xf]  ;;  %v3325_v22 = vld [vmem:[%s4356_s14 + $0x470] sm:$0xf]  ;;  %v3157_v5 = vld [vmem:[%s4356_s14 + $0x320] sm:$0xf] }
  0x97   : > { %1355 = vmatpush.bf16.msra.mxu0 %v2962_v35  ;;  %v3109_v35 = vld [vmem:[%s4356_s14 + $0x2c0] sm:$0xf] }
  0x98   : > { %1380 = vmatpush.bf16.msra.mxu2 %v3166_v39  ;;  %1368 = vmatpush.bf16.msra.mxu1 %v3058_v40  ;;  %v3014_v39 = vor.u32 %v3718_v29, %v3013_v28  ;;  %v2906_v40 = vor.u32 %v3691_v32, %v2905_v30  ;;  %v3110_v46 = vor.u32 %v3742_v36, %v3109_v35  ;;  %v3730_v28 = vld [vmem:[%s4356_s14 + $0x268] sm:$0xf0]  ;;  %v2953_v35 = vld [vmem:[%s4356_s14 + $0x188] sm:$0xf]  ;;  %v3703_v36 = vld [vmem:[%s4356_s14 + $0x190] sm:$0xf0] }
  0x99   : > { %1393 = vmatpush.bf16.msra.mxu3 %v3262_v47  ;;  %v3097_v47 = vld [vmem:[%s4356_s14 + $0x2a8] sm:$0xf]  ;;  %v2858_v32 = vor.u32 %v3679_v17, %v2857_v12  ;;  %v3062_v41 = vor.u32 %v3730_v28, %v3061_v27  ;;  %v3751_v12 = vld [vmem:[%s4356_s14 + $0x310] sm:$0xf0] }
  0x9a   : > { %v3098_v58 = vor.u32 %v3739_v48, %v3097_v47  ;;  %v3205_v48 = vld [vmem:[%s4356_s14 + $0x380] sm:$0xf] }
  0x9b   : > { %1356 = vmatpush.bf16.msra.mxu0 %v2950_v51  ;;  %v3002_v51 = vor.u32 %v3715_v43, %v3001_v42  ;;  %v3793_v42 = vld [vmem:[%s4356_s14 + $0x460] sm:$0xf0]  ;;  %v3049_v43 = vld [vmem:[%s4356_s14 + $0x248] sm:$0xf] }
  0x9c   : > { %1381 = vmatpush.bf16.msra.mxu2 %v3154_v52  ;;  %1369 = vmatpush.bf16.msra.mxu1 %v3046_v54  ;;  %v2894_v52 = vor.u32 %v3688_v45, %v2893_v44  ;;  %v2989_v54 = vld [vmem:[%s4356_s14 + $0x1d0] sm:$0xf]  ;;  %v3727_v44 = vld [vmem:[%s4356_s14 + $0x250] sm:$0xf0]  ;;  %v2954_v45 = vor.u32 %v3703_v36, %v2953_v35 }
  0x9d   : > { %1394 = vmatpush.bf16.msra.mxu3 %v3250_v61  ;;  %v2786_v61 = vor.u32 %v3661_v53, %v2785_v50  ;;  %v3050_v50 = vor.u32 %v3727_v44, %v3049_v43 }
  0x9e   : > { %1357 = vmatmul.bf16.vlgmr.msra.gmra.mxu0 %v4478_v31 }
  0x9f   : > { %1401 = vmatpush.bf16.msrb.mxu0 %v2846_v55  ;;  %1370 = vmatmul.bf16.vlgmr.msra.gmra.mxu1 %v4482_v34  ;;  %v3712_v55 = vld [vmem:[%s4356_s14 + $0x1d8] sm:$0xf0] }
  0xa0   : > { %1414 = vmatpush.bf16.msrb.mxu1 %v2942_v59  ;;  %1382 = vmatpush.bf16.msra.mxu2 %v3142_v3  ;;  %v3085_v59 = vld [vmem:[%s4356_s14 + $0x290] sm:$0xf]  ;;  %v2990_v63 = vor.u32 %v3712_v55, %v2989_v54  ;;  %v3709_v3 = vld [vmem:[%s4356_s14 + $0x1c0] sm:$0xf0]  ;;  %v3193_v55 = vld [vmem:[%s4356_s14 + $0x368] sm:$0xf] }
  0xa1   : > { %1395 = vmatpush.bf16.msra.mxu3 %v3238_v11  ;;  %v3655_v11 = vld [vmem:[%s4356_s14 + $0x10] sm:$0xf0]  ;;  %v2978_v15 = vor.u32 %v3709_v3, %v2977_v2  ;;  %v3265_v2 = vld [vmem:[%s4356_s14 + $0x3f8] sm:$0xf] }
  0xa2   : > { %v2762_v29 = vor.u32 %v3655_v11, %v2761_v10  ;;  %v3145_v11 = vld [vmem:[%s4356_s14 + $0x308] sm:$0xf] }
  0xa3   : > { %1402 = vmatpush.bf16.msrb.mxu0 %v2834_v6  ;;  %1383 = vmatmul.bf16.vlgmr.msra.gmra.mxu2 %v4518_v23  ;;  %v3086_v6 = vor.u32 %v3736_v60, %v3085_v59  ;;  %v3181_v59 = vld [vmem:[%s4356_s14 + $0x350] sm:$0xf]  ;;  %v3760_v60 = vld [vmem:[%s4356_s14 + $0x358] sm:$0xf0]  ;;  %v3146_v17 = vor.u32 %v3751_v12, %v3145_v11 }
  0xa4   : > { %1427 = vmatpush.bf16.msrb.mxu2 %v3038_v8  ;;  %1415 = vmatpush.bf16.msrb.mxu1 %v2930_v9  ;;  %v3733_v8 = vld [vmem:[%s4356_s14 + $0x280] sm:$0xf0]  ;;  %v2774_v9 = vor.u32 %v3658_v1, %v2773_v62  ;;  %v3784_v62 = vld [vmem:[%s4356_s14 + $0x418] sm:$0xf0] }
  0xa5   : > { %1440 = vmatpush.bf16.msrb.mxu3 %v3134_v18  ;;  %v2965_v18 = vld [vmem:[%s4356_s14 + $0x1a0] sm:$0xf]  ;;  %v3757_v1 = vld [vmem:[%s4356_s14 + $0x340] sm:$0xf0] }
  0xa6   : > { %1396 = vmatmul.bf16.vlgmr.msra.gmra.mxu3 %v4522_v26  ;;  %v2966_v30 = vor.u32 %v3706_v19, %v2965_v18 }
  0xa7   : > { %1403 = vmatpush.bf16.msrb.mxu0 %v2822_v21  ;;  %v3772_v21 = vld [vmem:[%s4356_s14 + $0x3b8] sm:$0xf0] }
  0xa8   : > { %1428 = vmatpush.bf16.msrb.mxu2 %v3026_v24  ;;  %1416 = vmatpush.bf16.msrb.mxu1 %v2918_v25  ;;  %v3074_v24 = vor.u32 %v3733_v8, %v3073_v7  ;;  %v3796_v25 = vld [vmem:[%s4356_s14 + $0x478] sm:$0xf0]  ;;  %v3253_v7 = vld [vmem:[%s4356_s14 + $0x3e0] sm:$0xf]  ;;  %v3778_v8 = vld [vmem:[%s4356_s14 + $0x3e8] sm:$0xf0] }
  0xa9   : > { %1441 = vmatpush.bf16.msrb.mxu3 %v3122_v33  ;;  %v3230_v33 = vor.u32 %v3772_v21, %v3229_v20  ;;  %v3254_v10 = vor.u32 %v3778_v8, %v3253_v7 }
  0xab   : > { %1404 = vmatpush.bf16.msrb.mxu0 %v2810_v37  ;;  %v3326_v37 = vor.u32 %v3796_v25, %v3325_v22 }
  0xac   : > { %1429 = vmatpush.bf16.msrb.mxu2 %v3014_v39  ;;  %1417 = vmatpush.bf16.msrb.mxu1 %v2906_v40  ;;  %v3769_v39 = vld [vmem:[%s4356_s14 + $0x3a0] sm:$0xf0]  ;;  %v3313_v40 = vld [vmem:[%s4356_s14 + $0x458] sm:$0xf] }
  0xad   : > { %1442 = vmatpush.bf16.msrb.mxu3 %v3110_v46  ;;  %v3218_v46 = vor.u32 %v3769_v39, %v3217_v38  ;;  %v3314_v47 = vor.u32 %v3793_v42, %v3313_v40 }
  0xaf   : > { %1405 = vmatpush.bf16.msrb.mxu0 %v2798_v49  ;;  %v3766_v49 = vld [vmem:[%s4356_s14 + $0x388] sm:$0xf0] }
  0xb0   : > { %1430 = vmatpush.bf16.msrb.mxu2 %v3002_v51  ;;  %1418 = vmatpush.bf16.msrb.mxu1 %v2894_v52  ;;  %v3301_v51 = vld [vmem:[%s4356_s14 + $0x440] sm:$0xf]  ;;  %v3790_v52 = vld [vmem:[%s4356_s14 + $0x448] sm:$0xf0]  ;;  %v3206_v53 = vor.u32 %v3766_v49, %v3205_v48 }
  0xb1   : > { %1443 = vmatpush.bf16.msrb.mxu3 %v3098_v58  ;;  %v3302_v54 = vor.u32 %v3790_v52, %v3301_v51 }
  0xb3   : > { %1406 = vmatpush.bf16.msrb.mxu0 %v2786_v61  ;;  %v3277_v61 = vld [vmem:[%s4356_s14 + $0x410] sm:$0xf] }
  0xb4   : > { %1431 = vmatpush.bf16.msrb.mxu2 %v2990_v63  ;;  %1419 = vmatpush.bf16.msrb.mxu1 %v2882_v0  ;;  %v3278_v63 = vor.u32 %v3784_v62, %v3277_v61  ;;  %v3169_v0 = vld [vmem:[%s4356_s14 + $0x338] sm:$0xf] }
  0xb5   : > { %1444 = vmatpush.bf16.msrb.mxu3 %v3086_v6  ;;  %v3170_v3 = vor.u32 %v3757_v1, %v3169_v0  ;;  %v3754_v6 = vld [vmem:[%s4356_s14 + $0x328] sm:$0xf0] }
  0xb7   : > { %1407 = vmatpush.bf16.msrb.mxu0 %v2774_v9  ;;  %v3158_v9 = vor.u32 %v3754_v6, %v3157_v5 }
  0xb8   : > { %1432 = vmatpush.bf16.msrb.mxu2 %v2978_v15  ;;  %1420 = vmatpush.bf16.msrb.mxu1 %v2870_v16  ;;  %v3241_v15 = vld [vmem:[%s4356_s14 + $0x3c8] sm:$0xf]  ;;  %v3775_v16 = vld [vmem:[%s4356_s14 + $0x3d0] sm:$0xf0] }
  0xb9   : > { %1445 = vmatpush.bf16.msrb.mxu3 %v3074_v24  ;;  %v3242_v18 = vor.u32 %v3775_v16, %v3241_v15 }
  0xbb   : > { %1408 = vmatpush.bf16.msrb.mxu0 %v2762_v29 }
  0xbc   : > { %1433 = vmatpush.bf16.msrb.mxu2 %v2966_v30  ;;  %1421 = vmatpush.bf16.msrb.mxu1 %v2858_v32 }
  0xbd   : > { %1446 = vmatpush.bf16.msrb.mxu3 %v3062_v41 }
  0xbe   : > { %1409 = vmatmul.bf16.vlgmr.msrb.gmra.mxu0 %v4463_v13  ;;  %v3289_v13 = vld [vmem:[%s4356_s14 + $0x428] sm:$0xf] }
  0xbf   : > { %1453 = vmatpush.bf16.msra.mxu0 %v3230_v33  ;;  %1422 = vmatmul.bf16.vlgmr.msrb.gmra.mxu1 %v4465_v14  ;;  %v3194_v14 = vor.u32 %v3763_v56, %v3193_v55  ;;  %v3290_v58 = vor.u32 %v3787_v57, %v3289_v13 }
  0xc0   : > { %1466 = vmatpush.bf16.msra.mxu1 %v3326_v37  ;;  %1434 = vmatpush.bf16.msrb.mxu2 %v2954_v45 }
  0xc1   : > { %1447 = vmatpush.bf16.msrb.mxu3 %v3050_v50 }
  0xc3   : > { %1454 = vmatpush.bf16.msra.mxu0 %v3218_v46  ;;  %1435 = vmatmul.bf16.vlgmr.msrb.gmra.mxu2 %v4478_v31  ;;  %v3182_v31 = vor.u32 %v3760_v60, %v3181_v59 }
  0xc4   : > { %1467 = vmatpush.bf16.msra.mxu1 %v3314_v47  ;;  %1448 = vmatmul.bf16.vlgmr.msrb.gmra.mxu3 %v4482_v34  ;;  %v3781_v34 = vld [vmem:[%s4356_s14 + $0x400] sm:$0xf0] }
  0xc5   : > { %v3266_v4 = vor.u32 %v3781_v34, %v3265_v2 }
  0xc7   : > { %1455 = vmatpush.bf16.msra.mxu0 %v3206_v53 }
  0xc8   : > { %1468 = vmatpush.bf16.msra.mxu1 %v3302_v54 }
  0xcb   : > { %1456 = vmatpush.bf16.msra.mxu0 %v3194_v14 }
  0xcc   : > { %1469 = vmatpush.bf16.msra.mxu1 %v3290_v58 }
  0xcf   : > { %1457 = vmatpush.bf16.msra.mxu0 %v3182_v31 }
  0xd0   : > { %1470 = vmatpush.bf16.msra.mxu1 %v3278_v63 }
  0xd3   : > { %1458 = vmatpush.bf16.msra.mxu0 %v3170_v3 }
  0xd4   : > { %1471 = vmatpush.bf16.msra.mxu1 %v3266_v4 }
  0xd7   : > { %1459 = vmatpush.bf16.msra.mxu0 %v3158_v9 }
  0xd8   : > { %1472 = vmatpush.bf16.msra.mxu1 %v3254_v10 }
  0xdb   : > { %1460 = vmatpush.bf16.msra.mxu0 %v3146_v17 }
  0xdc   : > { %1473 = vmatpush.bf16.msra.mxu1 %v3242_v18 }
  0xde   : > { %1461 = vmatmul.bf16.vlgmr.msra.gmra.mxu0 %v4518_v23  ;;  %v1254_v19 = vpop.f32.mrf.mxu0  ;;  %v1267_v20 = vpop.f32.mrf.mxu1 }
  0xdf   : > { %1474 = vmatmul.bf16.vlgmr.msra.gmra.mxu1 %v4522_v26  ;;  %v1268_v21 = vadd.f32 %v1267_v20, %v1254_v19 }
  0xe6   : > { %v1256_v22 = vpop.f32.mrf.mxu0  ;;  %v1269_v24 = vpop.f32.mrf.mxu1 }
  0xe8   : > { %v1280_v25 = vpop.f32.mrf.mxu2  ;;  %v1293_v27 = vpop.f32.mrf.mxu3 }
  0xe9   : > { %v1281_v28 = vadd.f32 %v1280_v25, %v1268_v21 }
  0xeb   : > { %v1294_v29 = vadd.f32 %v1293_v27, %v1281_v28 }
  0xf0   : > { %v1282_v30 = vpop.f32.mrf.mxu2  ;;  %v1295_v32 = vpop.f32.mrf.mxu3 }
  0xfb   : > { %v1306_v33 = vpop.f32.mrf.mxu0 }
  0xfc   : > { %v1307_v35 = vadd.f32 %v1306_v33, %v1294_v29  ;;  %v1319_v36 = vpop.f32.mrf.mxu1 }
  0xfe   : > { %v4688_v37 = vadd.f32 %v1319_v36, %v1307_v35 }
 0x103   : > { %v1308_v38 = vpop.f32.mrf.mxu0 }
 0x104   : > { %v1321_v23 = vpop.f32.mrf.mxu1 }
 0x106   : > { %v1332_v39 = vpop.f32.mrf.mxu2 }
 0x109   : > { %v1345_v26 = vpop.f32.mrf.mxu3 }
 0x10a   : > { %v1346_v40 = vadd.f32 %v1345_v26, %v1332_v39 }
 0x10e   : > { %v1334_v41 = vpop.f32.mrf.mxu2 }
 0x111   : > { %v1347_v42 = vpop.f32.mrf.mxu3 }
 0x11b   : > { %v1358_v43 = vpop.f32.mrf.mxu0 }
 0x11c   : > { %v1371_v44 = vpop.f32.mrf.mxu1  ;;  %v1359_v45 = vadd.f32 %v1358_v43, %v1346_v40 }
 0x11e   : > { %v1372_v46 = vadd.f32 %v1371_v44, %v1359_v45 }
 0x123   : > { %v1360_v47 = vpop.f32.mrf.mxu0 }
 0x124   : > { %v1373_v48 = vpop.f32.mrf.mxu1 }
 0x126   : > { %v1384_v49 = vpop.f32.mrf.mxu2 }
 0x127   : > { %v1385_v50 = vadd.f32 %v1384_v49, %v1372_v46 }
 0x129   : > { %v1397_v51 = vpop.f32.mrf.mxu3 }
 0x12a   : > { %v4690_v52 = vadd.f32 %v1397_v51, %v1385_v50 }
 0x12e   : > { %v1386_v53 = vpop.f32.mrf.mxu2 }
 0x131   : > { %v1399_v54 = vpop.f32.mrf.mxu3 }
 0x13b   : > { %v1410_v55 = vpop.f32.mrf.mxu0 }
 0x13c   : > { %v1423_v56 = vpop.f32.mrf.mxu1 }
 0x13d   : > { %v1424_v60 = vadd.f32 %v1423_v56, %v1410_v55 }
 0x143   : > { %v1412_v13 = vpop.f32.mrf.mxu0 }
 0x144   : > { %v1425_v57 = vpop.f32.mrf.mxu1 }
 0x146   : > { %v1436_v14 = vpop.f32.mrf.mxu2 }
 0x147   : > { %v1449_v58 = vpop.f32.mrf.mxu3  ;;  %v1437_v62 = vadd.f32 %v1436_v14, %v1424_v60 }
 0x149   : > { %v1450_v31 = vadd.f32 %v1449_v58, %v1437_v62 }
 0x14e   : > { %v1438_v59 = vpop.f32.mrf.mxu2 }
 0x14f   : > { %v1451_v61 = vpop.f32.mrf.mxu3 }
 0x15b   : > { %v1462_v63 = vpop.f32.mrf.mxu0 }
 0x15c   : > { %v1463_v0 = vadd.f32 %v1462_v63, %v1450_v31  ;;  %v1475_v1 = vpop.f32.mrf.mxu1 }
 0x15e   : > { %v4692_v2 = vadd.f32 %v1475_v1, %v1463_v0 }
 0x160   : > { %1482 = sbr.rel (%p2742_p9) target bundleno = 1164 (0x48c), region = 56 }
 0x163   : > { %v1464_v34 = vpop.f32.mrf.mxu0 }
 0x164   : > { %v1477_v3 = vpop.f32.mrf.mxu1 }
 0x165   : > { %v3414_v4 = vld [vmem:[#allocation8 + $0x150] sm:$0xf]  ;;  %v3819_v5 = vld [vmem:[#allocation8 + $0x164] sm:$0xf0]  ;;  %v3818_v6 = vld [vmem:[#allocation8 + $0x154] sm:$0xf] }
 0x166   : > { %v3415_v7 = vor.u32 %v3819_v5, %v3414_v4  ;;  %v3416_v8 = vld [vmem:[#allocation8 + $0x168] sm:$0xf0]  ;;  %v3402_v9 = vld [vmem:[#allocation8 + $0x120] sm:$0xf]  ;;  %v3816_v10 = vld [vmem:[#allocation8 + $0x134] sm:$0xf0] }
 0x167   : > { %v4696_v11 = vor.u32 %v3818_v6, %v3416_v8  ;;  %v3815_v12 = vld [vmem:[#allocation8 + $0x124] sm:$0xf]  ;;  %v3404_v15 = vld [vmem:[#allocation8 + $0x138] sm:$0xf0]  ;;  %v3403_v16 = vor.u32 %v3816_v10, %v3402_v9  ;;  %v3390_v18 = vld [vmem:[#allocation8 + $0xf0] sm:$0xf] }
 0x168   : > { %1657 = vmatpush.bf16.msra.mxu0 %v3415_v7  ;;  %1744 = vmatpush.bf16.msra.mxu3 %v3415_v7  ;;  %v4699_v17 = vor.u32 %v3815_v12, %v3404_v15  ;;  %v3813_v19 = vld [vmem:[#allocation8 + $0x104] sm:$0xf0]  ;;  %v3812_v20 = vld [vmem:[#allocation8 + $0xf4] sm:$0xf]  ;;  %v3392_v21 = vld [vmem:[#allocation8 + $0x108] sm:$0xf0] }
 0x169   : > { %1670 = vmatpush.bf16.msra.mxu1 %v4696_v11  ;;  %v3422_v22 = vld [vmem:[#allocation8 + $0x158] sm:$0xf]  ;;  %v3391_v24 = vor.u32 %v3813_v19, %v3390_v18  ;;  %v3820_v25 = vld [vmem:[#allocation8 + $0x16c] sm:$0xf0]  ;;  %v4702_v27 = vor.u32 %v3812_v20, %v3392_v21  ;;  %v3378_v28 = vld [vmem:[#allocation8 + $0xc0] sm:$0xf] }
 0x16a   : > { %v3810_v29 = vld [vmem:[#allocation8 + $0xd4] sm:$0xf0]  ;;  %v4704_v30 = vor.u32 %v3820_v25, %v3422_v22  ;;  %v3410_v32 = vld [vmem:[#allocation8 + $0x128] sm:$0xf]  ;;  %v3809_v33 = vld [vmem:[#allocation8 + $0xc4] sm:$0xf] }
 0x16b   : > { %v3380_v35 = vld [vmem:[#allocation8 + $0xd8] sm:$0xf0]  ;;  %v3817_v36 = vld [vmem:[#allocation8 + $0x13c] sm:$0xf0]  ;;  %v3379_v23 = vor.u32 %v3810_v29, %v3378_v28  ;;  %v3398_v39 = vld [vmem:[#allocation8 + $0xf8] sm:$0xf] }
 0x16c   : > { %1658 = vmatpush.bf16.msra.mxu0 %v3403_v16  ;;  %1745 = vmatpush.bf16.msra.mxu3 %v3403_v16  ;;  %v4707_v38 = vor.u32 %v3817_v36, %v3410_v32  ;;  %v3814_v26 = vld [vmem:[#allocation8 + $0x10c] sm:$0xf0]  ;;  %v4710_v40 = vor.u32 %v3809_v33, %v3380_v35  ;;  %v3807_v42 = vld [vmem:[#allocation8 + $0xa4] sm:$0xf0]  ;;  %v3806_v43 = vld [vmem:[#allocation8 + $0x94] sm:$0xf] }
 0x16d   : > { %1671 = vmatpush.bf16.msra.mxu1 %v4699_v17  ;;  %1683 = vmatpush.bf16.msra.mxu2 %v4704_v30  ;;  %v3366_v41 = vld [vmem:[#allocation8 + $0x90] sm:$0xf]  ;;  %v3368_v44 = vld [vmem:[#allocation8 + $0xa8] sm:$0xf0]  ;;  %v4713_v45 = vor.u32 %v3814_v26, %v3398_v39  ;;  %v3386_v47 = vld [vmem:[#allocation8 + $0xc8] sm:$0xf] }
 0x16e   : > { %v3367_v46 = vor.u32 %v3807_v42, %v3366_v41  ;;  %v3811_v48 = vld [vmem:[#allocation8 + $0xdc] sm:$0xf0]  ;;  %v3371_v49 = vor.u32 %v3806_v43, %v3368_v44  ;;  %v3804_v51 = vld [vmem:[#allocation8 + $0x74] sm:$0xf0]  ;;  %v3803_v53 = vld [vmem:[#allocation8 + $0x64] sm:$0xf] }
 0x16f   : > { %v3354_v50 = vld [vmem:[#allocation8 + $0x60] sm:$0xf]  ;;  %v3356_v54 = vld [vmem:[#allocation8 + $0x78] sm:$0xf0]  ;;  %v3387_v55 = vor.u32 %v3811_v48, %v3386_v47  ;;  %v3374_v13 = vld [vmem:[#allocation8 + $0x98] sm:$0xf] }
 0x170   : > { %1659 = vmatpush.bf16.msra.mxu0 %v3391_v24  ;;  %1746 = vmatpush.bf16.msra.mxu3 %v3391_v24  ;;  %v3355_v56 = vor.u32 %v3804_v51, %v3354_v50  ;;  %v3808_v57 = vld [vmem:[#allocation8 + $0xac] sm:$0xf0]  ;;  %v3359_v14 = vor.u32 %v3803_v53, %v3356_v54  ;;  %v3801_v59 = vld [vmem:[#allocation8 + $0x44] sm:$0xf0]  ;;  %v3800_v60 = vld [vmem:[#allocation8 + $0x34] sm:$0xf] }
 0x171   : > { %1672 = vmatpush.bf16.msra.mxu1 %v4702_v27  ;;  %1684 = vmatpush.bf16.msra.mxu2 %v4707_v38  ;;  %v3342_v58 = vld [vmem:[#allocation8 + $0x30] sm:$0xf]  ;;  %v3344_v61 = vld [vmem:[#allocation8 + $0x48] sm:$0xf0]  ;;  %v3375_v62 = vor.u32 %v3808_v57, %v3374_v13  ;;  %v3362_v63 = vld [vmem:[#allocation8 + $0x68] sm:$0xf] }
 0x172   : > { %v3343_v31 = vor.u32 %v3801_v59, %v3342_v58  ;;  %v3805_v0 = vld [vmem:[#allocation8 + $0x7c] sm:$0xf0]  ;;  %v3347_v1 = vor.u32 %v3800_v60, %v3344_v61  ;;  %v3798_v3 = vld [vmem:[#allocation8 + $0x14] sm:$0xf0]  ;;  %v3797_v4 = vld [vmem:[#allocation8 + $0x4] sm:$0xf] }
 0x173   : > { %v3330_v34 = vld [vmem:[#allocation8] sm:$0xf]  ;;  %v3332_v5 = vld [vmem:[#allocation8 + $0x18] sm:$0xf0]  ;;  %v3363_v6 = vor.u32 %v3805_v0, %v3362_v63  ;;  %v3350_v8 = vld [vmem:[#allocation8 + $0x38] sm:$0xf] }
 0x174   : > { %1660 = vmatpush.bf16.msra.mxu0 %v3379_v23  ;;  %1747 = vmatpush.bf16.msra.mxu3 %v3379_v23  ;;  %v3331_v7 = vor.u32 %v3798_v3, %v3330_v34  ;;  %v3802_v9 = vld [vmem:[#allocation8 + $0x4c] sm:$0xf0]  ;;  %v3335_v10 = vor.u32 %v3797_v4, %v3332_v5  ;;  %v3338_v15 = vld [vmem:[#allocation8 + $0x8] sm:$0xf]  ;;  %v3799_v16 = vld [vmem:[#allocation8 + $0x1c] sm:$0xf0] }
 0x175   : > { %1673 = vmatpush.bf16.msra.mxu1 %v4710_v40  ;;  %1685 = vmatpush.bf16.msra.mxu2 %v4713_v45  ;;  %v3351_v12 = vor.u32 %v3802_v9, %v3350_v8  ;;  %v4216_v18 = vmov 0   ;;  %v3339_v19 = vor.u32 %v3799_v16, %v3338_v15 }
 0x178   : > { %1661 = vmatpush.bf16.msra.mxu0 %v3367_v46  ;;  %1748 = vmatpush.bf16.msra.mxu3 %v3367_v46 }
 0x179   : > { %1674 = vmatpush.bf16.msra.mxu1 %v3371_v49  ;;  %1686 = vmatpush.bf16.msra.mxu2 %v3387_v55 }
 0x17c   : > { %1662 = vmatpush.bf16.msra.mxu0 %v3355_v56  ;;  %1749 = vmatpush.bf16.msra.mxu3 %v3355_v56 }
 0x17d   : > { %1675 = vmatpush.bf16.msra.mxu1 %v3359_v14  ;;  %1687 = vmatpush.bf16.msra.mxu2 %v3375_v62 }
 0x180   : > { %1663 = vmatpush.bf16.msra.mxu0 %v3343_v31  ;;  %1750 = vmatpush.bf16.msra.mxu3 %v3343_v31 }
 0x181   : > { %1676 = vmatpush.bf16.msra.mxu1 %v3347_v1  ;;  %1688 = vmatpush.bf16.msra.mxu2 %v3363_v6 }
 0x184   : > { %1664 = vmatpush.bf16.msra.mxu0 %v3331_v7  ;;  %1751 = vmatpush.bf16.msra.mxu3 %v3331_v7 }
 0x185   : > { %1677 = vmatpush.bf16.msra.mxu1 %v3335_v10  ;;  %1689 = vmatpush.bf16.msra.mxu2 %v3351_v12 }
 0x187   : > { %1665 = vmatmul.bf16.vlgmr.msra.gmra.mxu0 %v4216_v18 }
 0x188   : > { %1757 = vmatpush.bf16.msrb.mxu0 %v4696_v11  ;;  %1678 = vmatmul.bf16.vlgmr.msra.gmra.mxu1 %v4216_v18  ;;  %v1515_v11 = vld [vmem:[#allocation8 + $0x1b0] sm:$0x11] }
 0x189   : > { %1770 = vmatpush.bf16.msrb.mxu1 %v4704_v30  ;;  %1690 = vmatpush.bf16.msra.mxu2 %v3339_v19  ;;  %v1518_v20 = vunpack.c.h.bf16 %v1515_v11 }
 0x18b   : > { %v1521_v22 = vperm.slane %v1518_v20, 0  ;;  %v4726_v25 = vperm.slane %v1518_v20, 1 }
 0x18c   : > { %1758 = vmatpush.bf16.msrb.mxu0 %v4699_v17  ;;  %1691 = vmatmul.bf16.vlgmr.msra.gmra.mxu2 %v4216_v18  ;;  %v1517_v17 = vunpack.c.l.bf16 %v1515_v11  ;;  %v3828_v18 = vld [vmem:[#allocation9 + $0x38] sm:$0xff] }
 0x18d   : > { %1771 = vmatpush.bf16.msrb.mxu1 %v4707_v38  ;;  %v4732_v29 = vadd.f32 %v1521_v22, %v4690_v52  ;;  %1912 = vmatpush.bf16.msrb.mxu2 %v3828_v18  ;;  %v3826_v22 = vld [vmem:[#allocation9 + $0x28] sm:$0xff] }
 0x18e   : > { %v1520_v21 = vperm.slane %v1517_v17, 0  ;;  %v4724_v24 = vperm.slane %v1517_v17, 1 }
 0x190   : > { %1759 = vmatpush.bf16.msrb.mxu0 %v4702_v27  ;;  %v4729_v27 = vadd.f32 %v1520_v21, %v4688_v37 }
 0x191   : > { %1772 = vmatpush.bf16.msrb.mxu1 %v4713_v45  ;;  %v1516_v45 = vld [vmem:[#allocation8 + $0x1b8] sm:$0x1] }
 0x192   : > { %v1519_v46 = vunpack.c.l.bf16 %v1516_v45 }
 0x194   : > { %1760 = vmatpush.bf16.msrb.mxu0 %v4710_v40  ;;  %v4738_v53 = vperm.slane %v1519_v46, 1  ;;  %v1522_v13 = vperm.slane %v1519_v46, 0 }
 0x195   : > { %1773 = vmatpush.bf16.msrb.mxu1 %v3387_v55 }
 0x198   : > { %1761 = vmatpush.bf16.msrb.mxu0 %v3371_v49 }
 0x199   : > { %1774 = vmatpush.bf16.msrb.mxu1 %v3375_v62  ;;  %v4742_v62 = vadd.f32 %v1522_v13, %v4692_v2 }
 0x19c   : > { %1762 = vmatpush.bf16.msrb.mxu0 %v3359_v14 }
 0x19d   : > { %1775 = vmatpush.bf16.msrb.mxu1 %v3363_v6 }
 0x1a0   : > { %1763 = vmatpush.bf16.msrb.mxu0 %v3347_v1 }
 0x1a1   : > { %1776 = vmatpush.bf16.msrb.mxu1 %v3351_v12 }
 0x1a4   : > { %1764 = vmatpush.bf16.msrb.mxu0 %v3335_v10 }
 0x1a5   : > { %1777 = vmatpush.bf16.msrb.mxu1 %v3339_v19  ;;  %v3827_v19 = vld [vmem:[#allocation9 + $0x30] sm:$0xff] }
 0x1a6   : > { %1913 = vmatpush.bf16.msrb.mxu2 %v3827_v19 }
 0x1aa   : > { %1914 = vmatpush.bf16.msrb.mxu2 %v3826_v22  ;;  %v3481_v22 = vld [vmem:[#allocation8 + $0x198] sm:$0xf0] }
 0x204   : > { %v1666_v28 = vpop.f32.mrf.mxu0 }
 0x205   : > { %v1667_v30 = vadd.f32 %v1666_v28, %v4724_v24  ;;  %v1679_v32 = vpop.f32.mrf.mxu1 }
 0x206   : > { %v1680_v33 = vadd.f32 %v1679_v32, %v4726_v25 }
 0x207   : > { %v1696_v35 = vadd.f32 %v1667_v30, %v4729_v27 }
 0x208   : > { %v1716_v36 = vadd.f32 %v1680_v33, %v4732_v29 }
 0x209   : > { %v3424_v38 = vmul.f32 -1.442695, %v1696_v35  ;;  %v3825_v35 = vld [vmem:[#allocation9 + $0x20] sm:$0xff] }
 0x20a   : > { %v3425_v23 = vmul.f32 -1.442695, %v1716_v36  ;;  %1915 = vmatpush.bf16.msrb.mxu2 %v3825_v35  ;;  %v1861_v35 = vld [vmem:[#allocation9 + $0x40] sm:$0x1] }
 0x20b   : > { %3963 = vpow2.f32 %v3424_v38 }
 0x20c   : > { %3965 = vpow2.f32 %v3425_v23  ;;  %v1668_v39 = vpop.f32.mrf.mxu0 }
 0x20d   : > { %v1681_v26 = vpop.f32.mrf.mxu1  ;;  %v3824_v39 = vld [vmem:[#allocation9 + $0x18] sm:$0xff] }
 0x20e   : > { %1916 = vmatpush.bf16.msrb.mxu2 %v3824_v39 }
 0x20f   : > { %v1692_v41 = vpop.f32.mrf.mxu2 }
 0x210   : > { %v1693_v59 = vadd.f32 %v1692_v41, %v4738_v53 }
 0x211   : > { %v3964_v40 = vpop.eup %3963 }
 0x212   : > { %v3966_v42 = vpop.eup %3965  ;;  %v1700_v43 = vadd.f32 1.0, %v3964_v40  ;;  %v3823_v40 = vld [vmem:[#allocation9 + $0x10] sm:$0xff] }
 0x213   : > { %v1720_v44 = vadd.f32 1.0, %v3966_v42  ;;  %1917 = vmatpush.bf16.msrb.mxu2 %v3823_v40 }
 0x214   : > { %3967 = vrcp.f32 %v1700_v43  ;;  %v1712_v56 = vand.u32 2147483648, %v1700_v43  ;;  %v1710_v14 = vand.u32 2147483647, %v1700_v43  ;;  %vm1706_vm1 = vweird.f32 %v1700_v43 }
 0x215   : > { %3969 = vrcp.f32 %v1720_v44  ;;  %vm1726_vm4 = vweird.f32 %v1720_v44  ;;  %v1732_v34 = vand.u32 2147483648, %v1720_v44  ;;  %v1730_v3 = vand.u32 2147483647, %v1720_v44 }
 0x216   : > { %v1713_v61 = vor.u32 1.1754944e-38, %v1712_v56  ;;  %vm1711_vm3 = vcmp.eq.f32.partialorder %v1710_v14, 8.507059e+37 }
 0x217   : > { %v1694_v47 = vpop.f32.mrf.mxu2  ;;  %v1733_v6 = vor.u32 1.1754944e-38, %v1732_v34  ;;  %vm1731_vm7 = vcmp.eq.f32.partialorder %v1730_v3, 8.507059e+37 }
 0x218   : > { %v3832_v47 = vld [vmem:[#allocation9 + $0x60] sm:$0xff] }
 0x219   : > { %1968 = vmatpush.bf16.msrb.mxu3 %v3832_v47 }
 0x21a   : > { %v3968_v48 = vpop.eup %3967 }
 0x21b   : > { %v3970_v49 = vpop.eup %3969  ;;  %v1702_v50 = vmul.f32 %v3968_v48, %v1700_v43  ;;  %vm1707_vm0 = vweird.f32 %v3968_v48  ;;  %v3822_v43 = vld [vmem:[#allocation9 + $0x8] sm:$0xff] }
 0x21c   : > { %v1722_v51 = vmul.f32 %v3970_v49, %v1720_v44  ;;  %vm1708_vm2 = vmor %vm1706_vm1, %vm1707_vm0  ;;  %vm1727_vm5 = vweird.f32 %v3970_v49  ;;  %1918 = vmatpush.bf16.msrb.mxu2 %v3822_v43  ;;  %v3821_v44 = vld [vmem:[#allocation9] sm:$0xff]  ;;  %vm1842_vm0 = vcmask 1041408   ;;  %vm1960_vm1 = vcmask 523264  }
 0x21d   : > { %v1703_v54 = vsub.f32 1.0, %v1702_v50  ;;  %vm1728_vm6 = vmor %vm1726_vm4, %vm1727_vm5 }
 0x21e   : > { %v1723_v55 = vsub.f32 1.0, %v1722_v51 }
 0x21f   : > { %v1704_v57 = vmul.f32 %v3968_v48, %v1703_v54 }
 0x220   : > { %v1724_v58 = vmul.f32 %v3970_v49, %v1723_v55  ;;  %1919 = vmatpush.bf16.msrb.mxu2 %v3821_v44  ;;  %v3830_v55 = vld [vmem:[#allocation9 + $0x50] sm:$0xff] }
 0x221   : > { %v1705_v60 = vadd.f32 %v3968_v48, %v1704_v57 }
 0x222   : > { %v1725_v0 = vadd.f32 %v3970_v49, %v1724_v58 }
 0x223   : > { %v1709_v31 = vsel %vm1708_vm2, %v3968_v48, %v1705_v60  ;;  %vm1998_vm2 = vcmask 130048  }
 0x224   : > { %v1714_v63 = vsel %vm1711_vm3, %v1713_v61, %v1709_v31  ;;  %v1729_v5 = vsel %vm1728_vm6, %v3970_v49, %v1725_v0  ;;  %vm2044_vm3 = vcmask 1043456  }
 0x225   : > { %v1736_v1 = vmul.f32 %v1714_v63, %v1693_v59  ;;  %v1734_v7 = vsel %vm1731_vm7, %v1733_v6, %v1729_v5 }
 0x226   : > { %v1739_v8 = vsub.f32 1.0, %v1734_v7  ;;  %v1741_v12 = vmul.f32 0.0, %v1734_v7 }
 0x227   : > { %v1737_v4 = vadd.f32 %v1736_v1, %v4742_v62 }
 0x229   : > { %3971 = vtanh.f32 %v1737_v4 }
 0x22f   : > { %v3972_v9 = vpop.eup %3971 }
 0x230   : > { %v1740_v10 = vmul.f32 %v3972_v9, %v1739_v8 }
 0x232   : > { %v4745_v15 = vadd.f32 %v1741_v12, %v1740_v10 }
 0x234   : > { %v1743_v16 = vpack.c.bf16 %v4745_v15, %v4745_v15  ;;  %v1838_v8 = vrot.slane %v4745_v15, 6 }
 0x236   : > { %1752 = vmatmul.bf16.vlgmr.msra.gmra.mxu3 %v1743_v16  ;;  %1765 = vmatmul.bf16.vlgmr.msrb.gmra.mxu0 %v1743_v16 }
 0x237   : > { %1778 = vmatmul.bf16.vlgmr.msrb.gmra.mxu1 %v1743_v16 }
 0x2b3   : > { %v1766_v11 = vpop.f32.mrf.mxu0 }
 0x2b4   : > { %v1767_v17 = vadd.f32 %v1766_v11, %v4726_v25  ;;  %v1779_v20 = vpop.f32.mrf.mxu1  ;;  %v3829_v11 = vld [vmem:[#allocation9 + $0x48] sm:$0xff] }
 0x2b5   : > { %v1780_v13 = vadd.f32 %v1779_v20, %v4738_v53  ;;  %v3833_v20 = vld [vmem:[#allocation8 + $0x184] sm:$0xf] }
 0x2b6   : > { %v1807_v21 = vrot.slane %v1767_v17, 6  ;;  %v3834_v17 = vld [vmem:[#allocation8 + $0x194] sm:$0xf0] }
 0x2b7   : > { %v1830_v61 = vrot.slane %v1780_v13, 6 }
 0x2b8   : > { %v1809_v28 = vadd.f32 %v1807_v21, %v4732_v29 }
 0x2b9   : > { %v1753_v30 = vpop.f32.mrf.mxu3 }
 0x2ba   : > { %v3427_v32 = vmul.f32 -1.442695, %v1809_v28  ;;  %v1754_v33 = vadd.f32 %v1753_v30, %v4724_v24  ;;  %v3487_v28 = vld [vmem:[#allocation8 + $0x188] sm:$0xf]  ;;  %v3835_v30 = vld [vmem:[#allocation8 + $0x19c] sm:$0xf0] }
 0x2bb   : > { %v1768_v36 = vpop.f32.mrf.mxu0 }
 0x2bc   : > { %3973 = vpow2.f32 %v3427_v32  ;;  %v1784_v38 = vrot.slane %v1754_v33, 6  ;;  %v1781_v23 = vpop.f32.mrf.mxu1  ;;  %v3484_v32 = vor.u32 %v3833_v20, %v3481_v22  ;;  %v3488_v33 = vor.u32 %v3835_v30, %v3487_v28 }
 0x2bd   : > { %v1862_v36 = vunpack.c.l.bf16 %v1861_v35 }
 0x2be   : > { %v1786_v25 = vadd.f32 %v1784_v38, %v4729_v27  ;;  %v3831_v27 = vld [vmem:[#allocation9 + $0x58] sm:$0xff]  ;;  %2022 = vmatpush.bf16.msra.mxu0 %v3484_v32  ;;  %2035 = vmatpush.bf16.msra.mxu1 %v3488_v33 }
 0x2bf   : > { %1969 = vmatpush.bf16.msrb.mxu3 %v3831_v27  ;;  %v1863_v38 = vperm.slane %v1862_v36, 0  ;;  %v1935_v40 = vperm.slane %v1862_v36, 1 }
 0x2c0   : > { %v3426_v26 = vmul.f32 -1.442695, %v1786_v25 }
 0x2c1   : > { %v1755_v41 = vpop.f32.mrf.mxu3 }
 0x2c2   : > { %v3974_v42 = vpop.eup %3973  ;;  %3975 = vpow2.f32 %v3426_v26 }
 0x2c3   : > { %v1813_v29 = vadd.f32 1.0, %v3974_v42  ;;  %1970 = vmatpush.bf16.msrb.mxu3 %v3830_v55 }
 0x2c5   : > { %3977 = vrcp.f32 %v1813_v29  ;;  %v1825_v1 = vand.u32 2147483648, %v1813_v29  ;;  %vm1819_vm13 = vweird.f32 %v1813_v29  ;;  %v1823_v3 = vand.u32 2147483647, %v1813_v29 }
 0x2c7   : > { %v1826_v5 = vor.u32 1.1754944e-38, %v1825_v1  ;;  %vm1824_vm15 = vcmp.eq.f32.partialorder %v1823_v3, 8.507059e+37  ;;  %1971 = vmatpush.bf16.msrb.mxu3 %v3829_v11 }
 0x2c8   : > { %v3976_v24 = vpop.eup %3975 }
 0x2c9   : > { %v1790_v45 = vadd.f32 1.0, %v3976_v24 }
 0x2cb   : > { %3979 = vrcp.f32 %v1790_v45  ;;  %v3978_v46 = vpop.eup %3977  ;;  %v1802_v56 = vand.u32 2147483648, %v1790_v45  ;;  %v1800_v14 = vand.u32 2147483647, %v1790_v45  ;;  %vm1796_vm9 = vweird.f32 %v1790_v45 }
 0x2cc   : > { %v1815_v48 = vmul.f32 %v3978_v46, %v1813_v29  ;;  %vm1820_vm12 = vweird.f32 %v3978_v46 }
 0x2cd   : > { %v1803_v60 = vor.u32 1.1754944e-38, %v1802_v56  ;;  %vm1801_vm11 = vcmp.eq.f32.partialorder %v1800_v14, 8.507059e+37  ;;  %vm1821_vm14 = vmor %vm1819_vm13, %vm1820_vm12 }
 0x2ce   : > { %v1816_v51 = vsub.f32 1.0, %v1815_v48 }
 0x2d0   : > { %v1817_v58 = vmul.f32 %v3978_v46, %v1816_v51 }
 0x2d1   : > { %v3980_v49 = vpop.eup %3979 }
 0x2d2   : > { %v1792_v50 = vmul.f32 %v3980_v49, %v1790_v45  ;;  %vm1797_vm8 = vweird.f32 %v3980_v49  ;;  %v1818_v0 = vadd.f32 %v3978_v46, %v1817_v58 }
 0x2d3   : > { %vm1798_vm10 = vmor %vm1796_vm9, %vm1797_vm8 }
 0x2d4   : > { %v1793_v54 = vsub.f32 1.0, %v1792_v50  ;;  %v1822_v4 = vsel %vm1821_vm14, %v3978_v46, %v1818_v0 }
 0x2d5   : > { %v1827_v6 = vsel %vm1824_vm15, %v1826_v5, %v1822_v4 }
 0x2d6   : > { %v1794_v57 = vmul.f32 %v3980_v49, %v1793_v54  ;;  %v1835_v7 = vsub.f32 1.0, %v1827_v6  ;;  %v1840_v12 = vmul.f32 %v1838_v8, %v1827_v6 }
 0x2d8   : > { %v1795_v59 = vadd.f32 %v3980_v49, %v1794_v57 }
 0x2da   : > { %v1799_v31 = vsel %vm1798_vm10, %v3980_v49, %v1795_v59 }
 0x2db   : > { %v1804_v63 = vsel %vm1801_vm11, %v1803_v60, %v1799_v31 }
 0x2dc   : > { %v1832_v34 = vmul.f32 %v1830_v61, %v1804_v63 }
 0x2de   : > { %v1833_v53 = vadd.f32 %v1832_v34, %v4742_v62  ;;  %v3479_v62 = vld [vmem:[#allocation8 + $0x180] sm:$0xf] }
 0x2df   : > { %v3480_v21 = vor.u32 %v3834_v17, %v3479_v62 }
 0x2e0   : > { %3981 = vtanh.f32 %v1833_v53 }
 0x2e1   : > { %2009 = vmatpush.bf16.msra.mxu3 %v3480_v21 }
 0x2e6   : > { %v3982_v9 = vpop.eup %3981 }
 0x2e7   : > { %v1836_v10 = vmul.f32 %v3982_v9, %v1835_v7 }
 0x2e9   : > { %v1841_v16 = vadd.f32 %v1840_v12, %v1836_v10 }
 0x2eb   : > { %v1843_v18 = vsel %vm1842_vm0, %v4745_v15, %v1841_v16 }
 0x2ec   : > { %v1844_v19 = vpack.c.bf16 %v1843_v18, %v1843_v18 }
 0x2ee   : > { %1920 = vmatmul.bf16.vlgmr.msrb.gmra.mxu2 %v1844_v19 }
 0x371   : > { %v1921_v15 = vpop.f32.mrf.mxu2 }
 0x372   : > { %v1922_v23 = vadd.f32 %v1921_v15, %v1863_v38 }
 0x374   : > { %v1925_v39 = vmax.f32 %v1922_v23, 0.0 }
 0x376   : > { %v1926_v25 = vpack.c.bf16 %v1925_v39, %v1925_v39 }
 0x378   : > { %3476 = vmatmul.msk.bf16.vlgmr.msrb.gmra.mxu3 %vm1960_vm1, %v1926_v25 }
 0x379   : > { %v1923_v26 = vpop.f32.mrf.mxu2 }
 0x3fb   : > { %v1973_v41 = vpop.f32.mrf.mxu3 }
 0x3fc   : > { %v1974_v42 = vadd.f32 %v1973_v41, %v1935_v40 }
 0x3fe   : > { %v1977_v29 = vpack.c.bf16 %v1974_v42, %v1974_v42 }
 0x400   : > { %3489 = vmatmul.msk.bf16.vlgmr.msra.gmra.mxu3 %vm1998_vm2, %v1977_v29  ;;  %3490 = vmatmul.msk.bf16.vlgmr.msra.gmra.mxu0 %vm1998_vm2, %v1977_v29 }
 0x401   : > { %3491 = vmatmul.msk.bf16.vlgmr.msra.gmra.mxu1 %vm1998_vm2, %v1977_v29 }
 0x403   : > { %v1975_v43 = vpop.f32.mrf.mxu3 }
 0x47d   : > { %v2024_v24 = vpop.f32.mrf.mxu0 }
 0x47e   : > { %v2037_v44 = vpop.f32.mrf.mxu1  ;;  %v2043_v45 = vrot.slane %v2024_v24, 4 }
 0x47f   : > { %2048 = vst [vmem:[#allocation2 + $0x8] sm:$0xf] %v2037_v44 }
 0x483   : > { %v2011_v46 = vpop.f32.mrf.mxu3 }
 0x484   : > { %v2045_v47 = vsel %vm2044_vm3, %v2011_v46, %v2043_v45 }
 0x485   : > { %2047 = vst [vmem:[#allocation2] sm:$0xff] %v2045_v47  ;;  %v2026_v48 = vpop.f32.mrf.mxu0 }
 0x486   : > { %v2039_v27 = vpop.f32.mrf.mxu1 }
 0x48b   : > { %v2013_v49 = vpop.f32.mrf.mxu3 }
 0x48c PF: > { %p3492_p5 = scmp.ne.s32.totalorder %s4266_s19, 1 }
 0x48d   : > { %s4218_s0 = smov (!%p3492_p5), 64   ;;  %s4219_s25 = smov (!%p3492_p5), 112  }
 0x48e   : > { %2052 = sbr.rel (%p3492_p5) target bundleno = 2010 (0x7da), region = 60  ;;  %s4220_s26 = smov (!%p3492_p5), 96  }
 0x493   : > { %v3579_v50 = vld [vmem:[#allocation8 + $0x15c] sm:$0xf]  ;;  %v3858_v51 = vld [vmem:[#allocation8 + $0x170] sm:$0xf0]  ;;  %v3857_v54 = vld [vmem:[#allocation8 + $0x160] sm:$0xf] }
 0x494   : > { %v3580_v55 = vor.u32 %v3858_v51, %v3579_v50  ;;  %v3581_v56 = vld [vmem:[#allocation8 + $0x174] sm:$0xf0]  ;;  %v3567_v13 = vld [vmem:[#allocation8 + $0x12c] sm:$0xf]  ;;  %v3855_v57 = vld [vmem:[#allocation8 + $0x140] sm:$0xf0] }
 0x495   : > { %v4758_v14 = vor.u32 %v3857_v54, %v3581_v56  ;;  %v3854_v58 = vld [vmem:[#allocation8 + $0x130] sm:$0xf]  ;;  %v3569_v59 = vld [vmem:[#allocation8 + $0x144] sm:$0xf0]  ;;  %v3568_v60 = vor.u32 %v3855_v57, %v3567_v13  ;;  %v3555_v31 = vld [vmem:[#allocation8 + $0xfc] sm:$0xf] }
 0x496   : > { %2243 = vmatpush.bf16.msra.mxu0 %v3580_v55  ;;  %2342 = vmatpush.bf16.msra.mxu3 %v3580_v55  ;;  %v4761_v61 = vor.u32 %v3854_v58, %v3569_v59  ;;  %v3852_v63 = vld [vmem:[#allocation8 + $0x110] sm:$0xf0]  ;;  %v3851_v0 = vld [vmem:[#allocation8 + $0x100] sm:$0xf]  ;;  %v3557_v1 = vld [vmem:[#allocation8 + $0x114] sm:$0xf0] }
 0x497   : > { %2256 = vmatpush.bf16.msra.mxu1 %v4758_v14  ;;  %v3587_v34 = vld [vmem:[#allocation8 + $0x164] sm:$0xf]  ;;  %v3556_v3 = vor.u32 %v3852_v63, %v3555_v31  ;;  %v3859_v53 = vld [vmem:[#allocation8 + $0x178] sm:$0xf0]  ;;  %v4764_v4 = vor.u32 %v3851_v0, %v3557_v1  ;;  %v3543_v5 = vld [vmem:[#allocation8 + $0xcc] sm:$0xf] }
 0x498   : > { %v3849_v6 = vld [vmem:[#allocation8 + $0xe0] sm:$0xf0]  ;;  %v4766_v7 = vor.u32 %v3859_v53, %v3587_v34  ;;  %v3575_v8 = vld [vmem:[#allocation8 + $0x134] sm:$0xf]  ;;  %v3848_v9 = vld [vmem:[#allocation8 + $0xd0] sm:$0xf] }
 0x499   : > { %v3545_v10 = vld [vmem:[#allocation8 + $0xe4] sm:$0xf0]  ;;  %v3856_v12 = vld [vmem:[#allocation8 + $0x148] sm:$0xf0]  ;;  %v3544_v18 = vor.u32 %v3849_v6, %v3543_v5  ;;  %v3563_v19 = vld [vmem:[#allocation8 + $0x104] sm:$0xf] }
 0x49a   : > { %2244 = vmatpush.bf16.msra.mxu0 %v3568_v60  ;;  %2343 = vmatpush.bf16.msra.mxu3 %v3568_v60  ;;  %v4769_v16 = vor.u32 %v3856_v12, %v3575_v8  ;;  %v3853_v11 = vld [vmem:[#allocation8 + $0x118] sm:$0xf0]  ;;  %v4772_v62 = vor.u32 %v3848_v9, %v3545_v10  ;;  %v3846_v20 = vld [vmem:[#allocation8 + $0xb0] sm:$0xf0]  ;;  %v3845_v21 = vld [vmem:[#allocation8 + $0xa0] sm:$0xf] }
 0x49b   : > { %2257 = vmatpush.bf16.msra.mxu1 %v4761_v61  ;;  %2269 = vmatpush.bf16.msra.mxu2 %v4766_v7  ;;  %v3531_v17 = vld [vmem:[#allocation8 + $0x9c] sm:$0xf]  ;;  %v3533_v22 = vld [vmem:[#allocation8 + $0xb4] sm:$0xf0]  ;;  %v4775_v30 = vor.u32 %v3853_v11, %v3563_v19  ;;  %v3551_v33 = vld [vmem:[#allocation8 + $0xd4] sm:$0xf] }
 0x49c   : > { %v2087_v28 = vld [vmem:[#allocation2] sm:$0xff]  ;;  %v3532_v32 = vor.u32 %v3846_v20, %v3531_v17  ;;  %v3850_v35 = vld [vmem:[#allocation8 + $0xe8] sm:$0xf0]  ;;  %v3536_v36 = vor.u32 %v3845_v21, %v3533_v22  ;;  %v3843_v15 = vld [vmem:[#allocation8 + $0x80] sm:$0xf0]  ;;  %v4217_v63 = vmov 0  }
 0x49d   : > { %v3519_v38 = vld [vmem:[#allocation8 + $0x6c] sm:$0xf]  ;;  %2091 = vst [vmem:[#allocation1] ss:$2 sm:$0xff] %v2087_v28  ;;  %v3842_v23 = vld [vmem:[#allocation8 + $0x70] sm:$0xf]  ;;  %v3552_v25 = vor.u32 %v3850_v35, %v3551_v33 }
 0x49e   : > { %2245 = vmatpush.bf16.msra.mxu0 %v3556_v3  ;;  %2344 = vmatpush.bf16.msra.mxu3 %v3556_v3  ;;  %v3521_v39 = vld [vmem:[#allocation8 + $0x84] sm:$0xf0]  ;;  %v3520_v26 = vor.u32 %v3843_v15, %v3519_v38  ;;  %v3539_v40 = vld [vmem:[#allocation8 + $0xa4] sm:$0xf]  ;;  %v3847_v41 = vld [vmem:[#allocation8 + $0xb8] sm:$0xf0] }
 0x49f   : > { %2258 = vmatpush.bf16.msra.mxu1 %v4764_v4  ;;  %2270 = vmatpush.bf16.msra.mxu2 %v4769_v16  ;;  %v3524_v42 = vor.u32 %v3842_v23, %v3521_v39  ;;  %v3507_v29 = vld [vmem:[#allocation8 + $0x3c] sm:$0xf]  ;;  %v3840_v43 = vld [vmem:[#allocation8 + $0x50] sm:$0xf0]  ;;  %v3839_v24 = vld [vmem:[#allocation8 + $0x40] sm:$0xf]  ;;  %v3540_v45 = vor.u32 %v3847_v41, %v3539_v40 }
 0x4a0   : > { %v3509_v44 = vld [vmem:[#allocation8 + $0x54] sm:$0xf0]  ;;  %v3508_v46 = vor.u32 %v3840_v43, %v3507_v29  ;;  %v3527_v47 = vld [vmem:[#allocation8 + $0x74] sm:$0xf]  ;;  %v3844_v48 = vld [vmem:[#allocation8 + $0x88] sm:$0xf0] }
 0x4a1   : > { %v3512_v27 = vor.u32 %v3839_v24, %v3509_v44  ;;  %v3495_v49 = vld [vmem:[#allocation8 + $0xc] sm:$0xf]  ;;  %v3837_v50 = vld [vmem:[#allocation8 + $0x20] sm:$0xf0]  ;;  %v3836_v51 = vld [vmem:[#allocation8 + $0x10] sm:$0xf]  ;;  %v3528_v55 = vor.u32 %v3844_v48, %v3527_v47 }
 0x4a2   : > { %2246 = vmatpush.bf16.msra.mxu0 %v3544_v18  ;;  %2345 = vmatpush.bf16.msra.mxu3 %v3544_v18  ;;  %v3497_v54 = vld [vmem:[#allocation8 + $0x24] sm:$0xf0]  ;;  %v3496_v56 = vor.u32 %v3837_v50, %v3495_v49  ;;  %v3515_v13 = vld [vmem:[#allocation8 + $0x44] sm:$0xf]  ;;  %v3841_v57 = vld [vmem:[#allocation8 + $0x58] sm:$0xf0] }
 0x4a3   : > { %2259 = vmatpush.bf16.msra.mxu1 %v4772_v62  ;;  %2271 = vmatpush.bf16.msra.mxu2 %v4775_v30  ;;  %v3500_v58 = vor.u32 %v3836_v51, %v3497_v54  ;;  %v3516_v59 = vor.u32 %v3841_v57, %v3515_v13  ;;  %v3503_v60 = vld [vmem:[#allocation8 + $0x14] sm:$0xf]  ;;  %v3838_v31 = vld [vmem:[#allocation8 + $0x28] sm:$0xf0]  ;;  %v2088_v1 = vld [vmem:[#allocation2 + $0x8] sm:$0xf] }
 0x4a4   : > { %v3504_v0 = vor.u32 %v3838_v31, %v3503_v60  ;;  %v2094_v34 = vld.sshfl [vmem:[#allocation1] sm:$0xff pattern:$0x75316420]  ;;  %2093 = vst [vmem:[#allocation1 + $0x10] ss:$2 sm:$0xff] %v2088_v1  ;;  %v3863_v29 = vld [vmem:[#allocation9 + $0x18] sm:$0xff] }
 0x4a5   : > { %v2095_v53 = vld.sshfl [vmem:[#allocation1 + $0x8] sm:$0xff pattern:$0x75316420]  ;;  %2501 = vrot.lane.b32.xlu2 %v3863_v29, %s4218_s0  ;;  %v3864_v54 = vld [vmem:[#allocation9 + $0x20] sm:$0xff]  ;;  %v3861_v1 = vld [vmem:[#allocation9 + $0x8] sm:$0xff] }
 0x4a6   : > { %2247 = vmatpush.bf16.msra.mxu0 %v3532_v32  ;;  %2346 = vmatpush.bf16.msra.mxu3 %v3532_v32  ;;  %v3866_v51 = vld [vmem:[#allocation9 + $0x30] sm:$0xff] }
 0x4a7   : > { %2260 = vmatpush.bf16.msra.mxu1 %v3536_v36  ;;  %2272 = vmatpush.bf16.msra.mxu2 %v3552_v25  ;;  %v3862_v57 = vld [vmem:[#allocation9 + $0x10] sm:$0xff] }
 0x4aa   : > { %2248 = vmatpush.bf16.msra.mxu0 %v3520_v26  ;;  %2347 = vmatpush.bf16.msra.mxu3 %v3520_v26  ;;  %v3865_v26 = vld [vmem:[#allocation9 + $0x28] sm:$0xff] }
 0x4ab   : > { %2261 = vmatpush.bf16.msra.mxu1 %v3524_v42  ;;  %2273 = vmatpush.bf16.msra.mxu2 %v3540_v45  ;;  %v2096_v24 = vld.sshfl [vmem:[#allocation1 + $0x10] sm:$0xff pattern:$0x75316420] }
 0x4ac   : > { %2505 = vrot.lane.b32.xlu1 %v3865_v26, %s4218_s0 }
 0x4ad   : > { %2499 = vrot.lane.b32.xlu2 %v3862_v57, %s4218_s0 }
 0x4ae   : > { %2249 = vmatpush.bf16.msra.mxu0 %v3508_v46  ;;  %2348 = vmatpush.bf16.msra.mxu3 %v3508_v46 }
 0x4af   : > { %2262 = vmatpush.bf16.msra.mxu1 %v3512_v27  ;;  %2274 = vmatpush.bf16.msra.mxu2 %v3528_v55 }
 0x4b2   : > { %2250 = vmatpush.bf16.msra.mxu0 %v3496_v56  ;;  %2349 = vmatpush.bf16.msra.mxu3 %v3496_v56 }
 0x4b3   : > { %2263 = vmatpush.bf16.msra.mxu1 %v3500_v58  ;;  %2275 = vmatpush.bf16.msra.mxu2 %v3516_v59 }
 0x4b4   : > { %2503 = vrot.lane.b32.xlu1 %v3864_v54, %s4218_s0  ;;  %v2453_v54 = vld [vmem:[#allocation9 + $0x40] sm:$0x1] }
 0x4b5   : > { %2251 = vmatmul.bf16.vlgmr.msra.gmra.mxu0 %v4217_v63 }
 0x4b6   : > { %2355 = vmatpush.bf16.msrb.mxu0 %v4758_v14  ;;  %2264 = vmatmul.bf16.vlgmr.msra.gmra.mxu1 %v4217_v63  ;;  %v2085_v14 = vld [vmem:[#allocation8 + $0x1bc] sm:$0x11] }
 0x4b7   : > { %2368 = vmatpush.bf16.msrb.mxu1 %v4766_v7  ;;  %2276 = vmatpush.bf16.msra.mxu2 %v3504_v0  ;;  %v2104_v3 = vunpack.c.h.bf16 %v2085_v14  ;;  %v2101_v7 = vadd.f32 %v2095_v53, %v4690_v52 }
 0x4b9   : > { %v2107_v8 = vperm.slane %v2104_v3, 0  ;;  %v4790_v9 = vperm.slane %v2104_v3, 1 }
 0x4ba   : > { %2356 = vmatpush.bf16.msrb.mxu0 %v4761_v61  ;;  %2277 = vmatmul.bf16.vlgmr.msra.gmra.mxu2 %v4217_v63  ;;  %v2103_v61 = vunpack.c.l.bf16 %v2085_v14 }
 0x4bb   : > { %2369 = vmatpush.bf16.msrb.mxu1 %v4769_v16  ;;  %v4795_v19 = vadd.f32 %v2107_v8, %v2101_v7 }
 0x4bc   : > { %v2106_v5 = vperm.slane %v2103_v61, 0  ;;  %v4787_v6 = vperm.slane %v2103_v61, 1 }
 0x4be   : > { %2357 = vmatpush.bf16.msrb.mxu0 %v4764_v4  ;;  %v2100_v4 = vadd.f32 %v2094_v34, %v4688_v37  ;;  %v3860_v34 = vld [vmem:[#allocation9] sm:$0xff] }
 0x4bf   : > { %2370 = vmatpush.bf16.msrb.mxu1 %v4775_v30  ;;  %2495 = vrot.lane.b32.xlu1 %v3860_v34, %s4218_s0 }
 0x4c0   : > { %v4792_v12 = vadd.f32 %v2106_v5, %v2100_v4 }
 0x4c2   : > { %2358 = vmatpush.bf16.msrb.mxu0 %v4772_v62 }
 0x4c3   : > { %2371 = vmatpush.bf16.msrb.mxu1 %v3552_v25  ;;  %v3867_v25 = vld [vmem:[#allocation9 + $0x38] sm:$0xff] }
 0x4c4   : > { %2509 = vrot.lane.b32.xlu0 %v3867_v25, %s4218_s0 }
 0x4c6   : > { %2359 = vmatpush.bf16.msrb.mxu0 %v3536_v36  ;;  %v2086_v36 = vld [vmem:[#allocation8 + $0x1c4] sm:$0x1] }
 0x4c7   : > { %2372 = vmatpush.bf16.msrb.mxu1 %v3540_v45  ;;  %v2105_v15 = vunpack.c.l.bf16 %v2086_v36 }
 0x4c9   : > { %v4800_v39 = vperm.slane %v2105_v15, 1  ;;  %v2108_v47 = vperm.slane %v2105_v15, 0 }
 0x4ca   : > { %2360 = vmatpush.bf16.msrb.mxu0 %v3524_v42 }
 0x4cb   : > { %2373 = vmatpush.bf16.msrb.mxu1 %v3528_v55 }
 0x4cc   : > { %2507 = vrot.lane.b32.xlu0 %v3866_v51, %s4218_s0 }
 0x4ce   : > { %2361 = vmatpush.bf16.msrb.mxu0 %v3512_v27  ;;  %v2102_v27 = vadd.f32 %v2096_v24, %v4692_v2 }
 0x4cf   : > { %2374 = vmatpush.bf16.msrb.mxu1 %v3516_v59 }
 0x4d0   : > { %v4807_v59 = vadd.f32 %v2108_v47, %v2102_v27 }
 0x4d2   : > { %2362 = vmatpush.bf16.msrb.mxu0 %v3500_v58 }
 0x4d3   : > { %2375 = vmatpush.bf16.msrb.mxu1 %v3504_v0 }
 0x4d4   : > { %2497 = vrot.lane.b32.xlu0 %v3861_v1, %s4218_s0 }
 0x532   : > { %v2252_v10 = vpop.f32.mrf.mxu0 }
 0x533   : > { %v2253_v16 = vadd.f32 %v2252_v10, %v4787_v6  ;;  %v2265_v18 = vpop.f32.mrf.mxu1 }
 0x534   : > { %v2266_v11 = vadd.f32 %v2265_v18, %v4790_v9 }
 0x535   : > { %v2283_v62 = vrot.slane %v2253_v16, 6 }
 0x536   : > { %v2306_v37 = vrot.slane %v2266_v11, 6 }
 0x537   : > { %v2285_v17 = vadd.f32 %v2283_v62, %v4792_v12  ;;  %v2510_v62 = vpop.permute.xlu0 %2509 }
 0x538   : > { %v2308_v20 = vadd.f32 %v2306_v37, %v4795_v19  ;;  %2523 = vmatpush.bf16.msrb.mxu2 %v2510_v62 }
 0x539   : > { %v3589_v52 = vmul.f32 -1.442695, %v2285_v17  ;;  %v2506_v17 = vpop.permute.xlu1 %2505 }
 0x53a   : > { %v3590_v21 = vmul.f32 -1.442695, %v2308_v20  ;;  %v2254_v22 = vpop.f32.mrf.mxu0 }
 0x53b   : > { %3983 = vpow2.f32 %v3589_v52  ;;  %v2267_v28 = vpop.f32.mrf.mxu1 }
 0x53c   : > { %3985 = vpow2.f32 %v3590_v21 }
 0x53d   : > { %v2278_v30 = vpop.f32.mrf.mxu2 }
 0x53e   : > { %v2279_v44 = vadd.f32 %v2278_v30, %v4800_v39  ;;  %v2502_v30 = vpop.permute.xlu2 %2501 }
 0x53f   : > { %v2508_v37 = vpop.permute.xlu0 %2507 }
 0x540   : > { %v2329_v13 = vrot.slane %v2279_v44, 6  ;;  %2524 = vmatpush.bf16.msrb.mxu2 %v2508_v37 }
 0x541   : > { %v3984_v32 = vpop.eup %3983 }
 0x542   : > { %v3986_v33 = vpop.eup %3985  ;;  %v2289_v35 = vadd.f32 1.0, %v3984_v32 }
 0x543   : > { %v2312_v38 = vadd.f32 1.0, %v3986_v33 }
 0x544   : > { %3987 = vrcp.f32 %v2289_v35  ;;  %v2301_v48 = vand.u32 2147483648, %v2289_v35  ;;  %v2299_v50 = vand.u32 2147483647, %v2289_v35  ;;  %vm2295_vm5 = vweird.f32 %v2289_v35  ;;  %2525 = vmatpush.bf16.msrb.mxu2 %v2506_v17 }
 0x545   : > { %3989 = vrcp.f32 %v2312_v38  ;;  %v2280_v23 = vpop.f32.mrf.mxu2  ;;  %vm2318_vm8 = vweird.f32 %v2312_v38  ;;  %v2324_v0 = vand.u32 2147483648, %v2312_v38  ;;  %v2322_v14 = vand.u32 2147483647, %v2312_v38 }
 0x546   : > { %v2302_v58 = vor.u32 1.1754944e-38, %v2301_v48  ;;  %vm2300_vm7 = vcmp.eq.f32.partialorder %v2299_v50, 8.507059e+37  ;;  %v3871_v48 = vld [vmem:[#allocation9 + $0x60] sm:$0xff] }
 0x547   : > { %v2325_v53 = vor.u32 1.1754944e-38, %v2324_v0  ;;  %vm2323_vm11 = vcmp.eq.f32.partialorder %v2322_v14, 8.507059e+37  ;;  %2572 = vrot.lane.b32.xlu2 %v3871_v48, %s4219_s25 }
 0x54a   : > { %v3988_v40 = vpop.eup %3987 }
 0x54b   : > { %v3990_v41 = vpop.eup %3989  ;;  %v2291_v42 = vmul.f32 %v3988_v40, %v2289_v35  ;;  %vm2296_vm4 = vweird.f32 %v3988_v40  ;;  %v2504_v35 = vpop.permute.xlu1 %2503 }
 0x54c   : > { %v2314_v43 = vmul.f32 %v3990_v41, %v2312_v38  ;;  %vm2297_vm6 = vmor %vm2295_vm5, %vm2296_vm4  ;;  %vm2319_vm9 = vweird.f32 %v3990_v41  ;;  %2526 = vmatpush.bf16.msrb.mxu2 %v2504_v35  ;;  %vm2582_vm4 = vcmask 523264   ;;  %vm2612_vm5 = vcmask 130048  }
 0x54d   : > { %v2292_v45 = vsub.f32 1.0, %v2291_v42  ;;  %vm2320_vm10 = vmor %vm2318_vm8, %vm2319_vm9  ;;  %vm2648_vm9 = vcmask 0  }
 0x54e   : > { %v2315_v46 = vsub.f32 1.0, %v2314_v43 }
 0x54f   : > { %v2293_v49 = vmul.f32 %v3988_v40, %v2292_v45  ;;  %v3870_v45 = vld [vmem:[#allocation9 + $0x58] sm:$0xff] }
 0x550   : > { %v2316_v55 = vmul.f32 %v3990_v41, %v2315_v46  ;;  %2527 = vmatpush.bf16.msrb.mxu2 %v2502_v30  ;;  %v3869_v46 = vld [vmem:[#allocation9 + $0x50] sm:$0xff]  ;;  %2570 = vrot.lane.b32.xlu0 %v3870_v45, %s4219_s25 }
 0x551   : > { %v2294_v56 = vadd.f32 %v3988_v40, %v2293_v49  ;;  %2568 = vrot.lane.b32.xlu1 %v3869_v46, %s4219_s25 }
 0x552   : > { %v2317_v31 = vadd.f32 %v3990_v41, %v2316_v55 }
 0x553   : > { %v2298_v60 = vsel %vm2297_vm6, %v3988_v40, %v2294_v56  ;;  %v2498_v40 = vpop.permute.xlu0 %2497 }
 0x554   : > { %v2303_v2 = vsel %vm2300_vm7, %v2302_v58, %v2298_v60  ;;  %v2321_v3 = vsel %vm2320_vm10, %v3990_v41, %v2317_v31  ;;  %v2454_v60 = vunpack.c.l.bf16 %v2453_v54 }
 0x555   : > { %v2331_v63 = vmul.f32 %v2329_v13, %v2303_v2  ;;  %v2326_v4 = vsel %vm2323_vm11, %v2325_v53, %v2321_v3  ;;  %v3868_v13 = vld [vmem:[#allocation9 + $0x48] sm:$0xff] }
 0x556   : > { %v2334_v5 = vsub.f32 1.0, %v2326_v4  ;;  %v2336_v10 = vmul.f32 0.0, %v2326_v4  ;;  %2520 = vrot.lane.b32.xlu2 %v2454_v60, %s4218_s0 }
 0x557   : > { %v2332_v61 = vadd.f32 %v2331_v63, %v4807_v59 }
 0x558   : > { %2566 = vrot.lane.b32.xlu0 %v3868_v13, %s4219_s25 }
 0x559   : > { %3991 = vtanh.f32 %v2332_v61 }
 0x55f   : > { %v3992_v7 = vpop.eup %3991 }
 0x560   : > { %v2335_v8 = vmul.f32 %v3992_v7, %v2334_v5 }
 0x562   : > { %v4815_v16 = vadd.f32 %v2336_v10, %v2335_v8 }
 0x564   : > { %v2338_v18 = vpack.c.bf16 %v4815_v16, %v4815_v16  ;;  %v2427_v3 = vrot.slane %v4815_v16, 2  ;;  %v3872_v16 = vld [vmem:[#allocation9 + $0x68] sm:$0xff] }
 0x566   : > { %v2340_v11 = vrot.slane %v2338_v18, 1 }
 0x568   : > { %2350 = vmatmul.bf16.vlgmr.msra.gmra.mxu3 %v2340_v11  ;;  %2363 = vmatmul.bf16.vlgmr.msrb.gmra.mxu0 %v2340_v11 }
 0x569   : > { %2376 = vmatmul.bf16.vlgmr.msrb.gmra.mxu1 %v2340_v11 }
 0x5c2   : > { %v2571_v37 = vpop.permute.xlu0 %2570 }
 0x5e5   : > { %v2364_v20 = vpop.f32.mrf.mxu0 }
 0x5e6   : > { %v2365_v52 = vadd.f32 %v2364_v20, %v4790_v9  ;;  %v2377_v21 = vpop.f32.mrf.mxu1  ;;  %v2500_v9 = vpop.permute.xlu2 %2499 }
 0x5e7   : > { %2528 = vmatpush.bf16.msrb.mxu2 %v2500_v9  ;;  %v2378_v57 = vadd.f32 %v2377_v21, %v4800_v39  ;;  %v2567_v20 = vpop.permute.xlu0 %2566 }
 0x5e8   : > { %v2401_v22 = vadd.f32 %v2365_v52, %v4795_v19  ;;  %v2578_v52 = vrot.slane %v2454_v60, 1 }
 0x5ea   : > { %v3592_v28 = vmul.f32 -1.442695, %v2401_v22  ;;  %2579 = vrot.lane.b32.xlu1 %v2578_v52, %s4219_s25  ;;  %2609 = vrot.lane.b32.xlu2 %v2578_v52, %s4220_s26 }
 0x5eb   : > { %v2351_v32 = vpop.f32.mrf.mxu3  ;;  %2529 = vmatpush.bf16.msrb.mxu2 %v2498_v40 }
 0x5ec   : > { %3993 = vpow2.f32 %v3592_v28  ;;  %v2352_v33 = vadd.f32 %v2351_v32, %v4787_v6  ;;  %v2496_v6 = vpop.permute.xlu1 %2495 }
 0x5ed   : > { %v2366_v36 = vpop.f32.mrf.mxu0 }
 0x5ee   : > { %v2381_v38 = vadd.f32 %v2352_v33, %v4792_v12  ;;  %v2379_v15 = vpop.f32.mrf.mxu1 }
 0x5ef   : > { %2530 = vmatpush.bf16.msrb.mxu2 %v2496_v6 }
 0x5f0   : > { %v3591_v23 = vmul.f32 -1.442695, %v2381_v38 }
 0x5f2   : > { %v3994_v25 = vpop.eup %3993  ;;  %3995 = vpow2.f32 %v3591_v23 }
 0x5f3   : > { %v2405_v26 = vadd.f32 1.0, %v3994_v25  ;;  %v2353_v19 = vpop.f32.mrf.mxu3 }
 0x5f4   : > { %v2569_v17 = vpop.permute.xlu1 %2568 }
 0x5f5   : > { %3997 = vrcp.f32 %v2405_v26  ;;  %v2417_v63 = vand.u32 2147483648, %v2405_v26  ;;  %vm2411_vm1 = vweird.f32 %v2405_v26  ;;  %v2415_v14 = vand.u32 2147483647, %v2405_v26 }
 0x5f7   : > { %v2418_v34 = vor.u32 1.1754944e-38, %v2417_v63  ;;  %vm2416_vm3 = vcmp.eq.f32.partialorder %v2415_v14, 8.507059e+37 }
 0x5f8   : > { %v3996_v41 = vpop.eup %3995 }
 0x5f9   : > { %v2385_v42 = vadd.f32 1.0, %v3996_v41 }
 0x5fb   : > { %3999 = vrcp.f32 %v2385_v42  ;;  %v3998_v29 = vpop.eup %3997  ;;  %v2397_v27 = vand.u32 2147483648, %v2385_v42  ;;  %v2395_v50 = vand.u32 2147483647, %v2385_v42  ;;  %vm2391_vm13 = vweird.f32 %v2385_v42 }
 0x5fc   : > { %v2407_v43 = vmul.f32 %v3998_v29, %v2405_v26  ;;  %vm2412_vm0 = vweird.f32 %v3998_v29 }
 0x5fd   : > { %v2398_v56 = vor.u32 1.1754944e-38, %v2397_v27  ;;  %vm2396_vm15 = vcmp.eq.f32.partialorder %v2395_v50, 8.507059e+37  ;;  %vm2413_vm2 = vmor %vm2411_vm1, %vm2412_vm0 }
 0x5fe   : > { %v2408_v44 = vsub.f32 1.0, %v2407_v43 }
 0x600   : > { %v2409_v51 = vmul.f32 %v3998_v29, %v2408_v44 }
 0x601   : > { %v4000_v12 = vpop.eup %3999 }
 0x602   : > { %v2387_v24 = vmul.f32 %v4000_v12, %v2385_v42  ;;  %vm2392_vm12 = vweird.f32 %v4000_v12  ;;  %v2410_v31 = vadd.f32 %v3998_v29, %v2409_v51 }
 0x603   : > { %vm2393_vm14 = vmor %vm2391_vm13, %vm2392_vm12 }
 0x604   : > { %v2388_v47 = vsub.f32 1.0, %v2387_v24  ;;  %v2414_v1 = vsel %vm2413_vm2, %v3998_v29, %v2410_v31 }
 0x605   : > { %v2419_v39 = vsel %vm2416_vm3, %v2418_v34, %v2414_v1 }
 0x606   : > { %v2389_v49 = vmul.f32 %v4000_v12, %v2388_v47  ;;  %v2424_v53 = vsub.f32 1.0, %v2419_v39  ;;  %v2429_v7 = vmul.f32 %v2427_v3, %v2419_v39 }
 0x608   : > { %v2390_v55 = vadd.f32 %v4000_v12, %v2389_v49 }
 0x60a   : > { %v2394_v58 = vsel %vm2393_vm14, %v4000_v12, %v2390_v55 }
 0x60b   : > { %v2399_v2 = vsel %vm2396_vm15, %v2398_v56, %v2394_v58 }
 0x60c   : > { %v2421_v0 = vmul.f32 %v2399_v2, %v2378_v57 }
 0x60e   : > { %v2422_v61 = vadd.f32 %v2421_v0, %v4807_v59  ;;  %v2573_v59 = vpop.permute.xlu2 %2572 }
 0x60f   : > { %2590 = vmatpush.bf16.msrb.mxu3 %v2573_v59 }
 0x610   : > { %4001 = vtanh.f32 %v2422_v61 }
 0x613   : > { %2591 = vmatpush.bf16.msrb.mxu3 %v2571_v37 }
 0x616   : > { %v4002_v4 = vpop.eup %4001  ;;  %v2521_v21 = vpop.permute.xlu2 %2520 }
 0x617   : > { %v2425_v5 = vmul.f32 %v4002_v4, %v2424_v53  ;;  %2592 = vmatpush.bf16.msrb.mxu3 %v2569_v17 }
 0x619   : > { %v2430_v8 = vadd.f32 %v2429_v7, %v2425_v5 }
 0x61b   : > { %v2432_v10 = vrot.slane %v2430_v8, 1  ;;  %2593 = vmatpush.bf16.msrb.mxu3 %v2567_v20 }
 0x61d   : > { %v2434_v18 = vadd.f32 %v2432_v10, %v2430_v8 }
 0x61f   : > { %v2435_v11 = vmul.f32 0.5, %v2434_v18  ;;  %2623 = vmatpush.bf16.msra.mxu3 %v3872_v16 }
 0x621   : > { %v2436_v62 = vpack.c.bf16 %v2435_v11, %v2435_v11 }
 0x623   : > { %2531 = vmatmul.bf16.vlgmr.msrb.gmra.mxu2 %v2436_v62 }
 0x644   : > { %v2610_v9 = vpop.permute.xlu2 %2609 }
 0x65c   : > { %v2580_v35 = vpop.permute.xlu1 %2579 }
 0x6a6   : > { %v2532_v22 = vpop.f32.mrf.mxu2 }
 0x6a7   : > { %v2533_v28 = vadd.f32 %v2532_v22, %v2521_v21 }
 0x6a9   : > { %v2536_v30 = vmax.f32 %v2533_v28, 0.0 }
 0x6ab   : > { %v2537_v32 = vpack.c.bf16 %v2536_v30, %v2536_v30 }
 0x6ad   : > { %3641 = vmatmul.msk.bf16.vlgmr.msrb.gmra.mxu3 %vm2582_vm4, %v2537_v32 }
 0x6ae   : > { %v2534_v33 = vpop.f32.mrf.mxu2 }
 0x730   : > { %v2595_v36 = vpop.f32.mrf.mxu3 }
 0x731   : > { %v2596_v38 = vadd.f32 %v2595_v36, %v2580_v35 }
 0x733   : > { %v2599_v15 = vmax.f32 %v2596_v38, 0.0 }
 0x735   : > { %v2600_v23 = vpack.c.bf16 %v2599_v15, %v2599_v15 }
 0x737   : > { %3646 = vmatmul.msk.bf16.vlgmr.msra.gmra.mxu3 %vm2612_vm5, %v2600_v23 }
 0x738   : > { %v2597_v25 = vpop.f32.mrf.mxu3 }
 0x7ba   : > { %v2625_v26 = vpop.f32.mrf.mxu3 }
 0x7bb   : > { %v2626_v19 = vadd.f32 %v2625_v26, %v2610_v9 }
 0x7bd   : > { %v3647_v40 = vmul.f32 -1.442695, %v2626_v19 }
 0x7bf   : > { %4003 = vpow2.f32 %v3647_v40 }
 0x7c2   : > { %v2627_v41 = vpop.f32.mrf.mxu3 }
 0x7c5   : > { %v4004_v42 = vpop.eup %4003 }
 0x7c6   : > { %v2632_v6 = vadd.f32 1.0, %v4004_v42 }
 0x7c8   : > { %4005 = vrcp.f32 %v2632_v6  ;;  %v2644_v24 = vand.u32 2147483648, %v2632_v6  ;;  %v2642_v45 = vand.u32 2147483647, %v2632_v6  ;;  %vm2638_vm7 = vweird.f32 %v2632_v6 }
 0x7ca   : > { %v2645_v47 = vor.u32 1.1754944e-38, %v2644_v24  ;;  %vm2643_vm10 = vcmp.eq.f32.partialorder %v2642_v45, 8.507059e+37 }
 0x7ce   : > { %v4006_v29 = vpop.eup %4005 }
 0x7cf   : > { %v2634_v43 = vmul.f32 %v4006_v29, %v2632_v6  ;;  %vm2639_vm6 = vweird.f32 %v4006_v29 }
 0x7d0   : > { %vm2640_vm8 = vmor %vm2638_vm7, %vm2639_vm6 }
 0x7d1   : > { %v2635_v12 = vsub.f32 1.0, %v2634_v43 }
 0x7d3   : > { %v2636_v44 = vmul.f32 %v4006_v29, %v2635_v12 }
 0x7d5   : > { %v2637_v46 = vadd.f32 %v4006_v29, %v2636_v44 }
 0x7d7   : > { %v2641_v48 = vsel %vm2640_vm8, %v4006_v29, %v2637_v46 }
 0x7d8   : > { %v2646_v27 = vsel %vm2643_vm10, %v2645_v47, %v2641_v48 }
 0x7d9   : > { %2649 = vst.msk [vmem:[#allocation11] sm:$0x1] %vm2648_vm9, %v2646_v27 }
 0x7da PF: > { %p3914_p8 = scmp.eq.s32.totalorder %s4266_s19, 1  ;;  %s4221_s10 = smov [#allocation11]  }
 0x7db   : > { %s2656_s12 = sshll.u32 %s4221_s10, 4  ;;  %s2658_s22 = sshll.u32 %s4853_s4, 4  ;;  %s2657_s12 = int_to_ptr.vmem [resolvable:$true] %s2656_s12  ;;  %s2659_s22 = int_to_ptr.hbm [resolvable:$true] %s2658_s22 }
 0x7dc   : > { %3890 = dma.vmem_to_hbm [thread:$0]  (%p3914_p8), %s2657_s12, 16, %s2659_s22, [#allocation5]  }
 0x7dd   : > { %4188 = dma.done.wait (%p3914_p8), [#allocation5], 16  }
 0x7de   : > { %4190 = vsyncadd (%p3914_p8), [#allocation5], 4294967280 }
 0x7df PF: > { %p17_p9 = scmp.ge.s32.totalorder %s4269_s20, 4   ;;  %s4863_s15 = smov %s4197_s16 }
 0x7e0   : > { %s4864_s16 = smov %s4201_s17  ;;  %s4865_s17 = smov %s4279_s23 }
 0x7e1   : > { %s4866_s18 = smov %s4269_s20  ;;  %19 = sbr.rel (!%p17_p9) target bundleno = 8 (0x8), region = 97 }
 0x7e6   :  { %2672 = vsyncpa [#allocation4], 1 }
 0x7e7   :  { %2674 = vsyncpa [#allocation4 + $0x1], 1 }
 0x7e8   :  { %2675 = vsyncpa [#allocation7], 1 }
 0x7e9   :  { %2677 = vsyncpa [#allocation7 + $0x1], 1 }
 0x7ea   :  { %2678 = vsyncpa [#allocation10], 1 }
 0x7eb   :  { %2679 = vsyncpa [#allocation5], 1 }
 0x7ec   :  { %2681 = vsyncpa [#allocation5 + $0x1], 1 }

</bundles_post_ra>
